<compile_context>
chip_gen: v5e
topology: v5e:2x2
jax: 0.10.0
libtpu: 0.0.40
codegen_flags: <defaults>
</compile_context>

<pallas_src>
import functools
import math

import jax
import jax.numpy as jnp
from jax import lax
from jax.experimental import pallas as pl
from jax.experimental.pallas import tpu as pltpu

LANE = 128  # TPU lane width; node/feature dims padded to a multiple of this.


def _round_up(v, m=LANE):
    return ((v + m - 1) // m) * m


def _pad2(a, rows, cols):
    """Zero-pad a 2-D array up to (rows, cols)."""
    out = jnp.zeros((rows, cols), a.dtype)
    return out.at[: a.shape[0], : a.shape[1]].set(a)


def gcn_fused_kernel(x_ref, adj_ref, w1_ref, b1_ref, wx_ref, bx_ref,
                     w2_ref, b2_ref, out_ref, *, nlayers, nclass):
    """Entire GCN forward fused in one kernel body (all operands VMEM-resident).

    Each layer: out = adj @ (h @ W) + b, with ReLU after gc1/gcx and a masked
    log_softmax (over the first `nclass` padded columns) after gc2.
    """
    adj = adj_ref[...]                      # [Np, Np] bf16 — resident for all layers
    wx = wx_ref[...]                        # [Hp, Hp] bf16 — shared hidden weights
    n_rows = adj.shape[0]
    hp = wx.shape[1]

    # Hoisted bias broadcasts (done once; not re-emitted per unrolled iteration).
    b1_full = jnp.broadcast_to(b1_ref[...], (n_rows, w1_ref.shape[1]))  # f32
    bx_full = jnp.broadcast_to(bx_ref[...], (n_rows, hp))               # f32
    b2_full = jnp.broadcast_to(b2_ref[...], (n_rows, w2_ref.shape[1]))  # f32

    def layer(h_bf16, w_bf16, b_f32_full):
        # support = h @ W   (MXU, bf16 inputs, f32 accumulation)
        s = jnp.dot(h_bf16, w_bf16, preferred_element_type=jnp.float32)
        # out = adj @ support + b   (MXU, f32 accumulation; bias add in f32)
        return jnp.dot(adj, s.astype(jnp.bfloat16),
                       preferred_element_type=jnp.float32) + b_f32_full

    # gc1 + relu  (dropout == identity in eval mode)
    h = jnp.maximum(layer(x_ref[...], w1_ref[...], b1_full), 0.0)
    h = h.astype(jnp.bfloat16)

    # 8 hidden gcx layers (shared weights), all in-VMEM, no HBM round-trips.
    def body(_, hc):
        o = jnp.maximum(layer(hc, wx, bx_full), 0.0)
        return o.astype(jnp.bfloat16)

    h = lax.fori_loop(0, nlayers, body, h, unroll=True)

    # gc2 + log_softmax over the real (unpadded) class columns, in f32.
    logits = layer(h, w2_ref[...], b2_full)                   # [Np, Cp] f32
    col = lax.broadcasted_iota(jnp.int32, logits.shape, 1)
    masked = jnp.where(col < nclass, logits, -1e30)            # exclude padding
    m = jnp.max(masked, axis=1, keepdims=True)
    shifted = masked - m
    lse = jnp.log(jnp.sum(jnp.exp(shifted), axis=1, keepdims=True))
    out_ref[...] = (shifted - lse).astype(out_ref.dtype)


def init_gc_params(key, in_features, out_features):
    """Mirror pygcn GraphConvolution.reset_parameters: U(-stdv, stdv)."""
    stdv = 1.0 / math.sqrt(out_features)
    kw, kb = jax.random.split(key)
    w = jax.random.uniform(kw, (in_features, out_features), jnp.float32, -stdv, stdv)
    b = jax.random.uniform(kb, (out_features,), jnp.float32, -stdv, stdv)
    return w, b


def gcn_forward(x, adj, params, *, nlayers=8):
    """GCN.forward (eval mode): gc1 -> relu -> [gcx -> relu] x nlayers -> gc2 -> log_softmax."""
    n, nfeat = x.shape
    w1, b1 = params["gc1"]
    wx, bx = params["gcx"]
    w2, b2 = params["gc2"]
    nhid = w1.shape[1]
    nclass = w2.shape[1]

    npad = _round_up(n)      # padded node count (lane-dense adjacency)
    fp = _round_up(nfeat)    # padded input-feature width
    hp = _round_up(nhid)     # padded hidden width
    cp = _round_up(nclass)   # padded class width (lane-dense output)

    # Lane-dense, bf16 MXU operands; f32 biases pre-shaped (1, F).
    # Padded adj rows/cols are zero, so padded node rows never contaminate
    # real rows; the wrapper slices them off at the end.
    x_p = _pad2(x, npad, fp).astype(jnp.bfloat16)
    adj_p = _pad2(adj, npad, npad).astype(jnp.bfloat16)
    w1_p = _pad2(w1, fp, hp).astype(jnp.bfloat16)
    wx_p = _pad2(wx, hp, hp).astype(jnp.bfloat16)
    w2_p = _pad2(w2, hp, cp).astype(jnp.bfloat16)
    b1_p = _pad2(b1.reshape(1, -1), 1, hp)
    bx_p = _pad2(bx.reshape(1, -1), 1, hp)
    b2_p = _pad2(b2.reshape(1, -1), 1, cp)

    kernel = functools.partial(gcn_fused_kernel, nlayers=nlayers, nclass=nclass)
    vmem_spec = pl.BlockSpec(memory_space=pltpu.MemorySpace.VMEM)

    out_p = pl.pallas_call(
        kernel,
        out_shape=jax.ShapeDtypeStruct((npad, cp), jnp.float32),
        in_specs=[vmem_spec] * 8,    # whole-array VMEM blocks, no grid/pipeline
        out_specs=vmem_spec,
        compiler_params=pltpu.CompilerParams(
            vmem_limit_bytes=8 * 1024 * 1024,
        ),
    )(x_p, adj_p, w1_p, b1_p, wx_p, bx_p, w2_p, b2_p)

    # Drop the padding on the node and class dimensions.
    return out_p[:n, :nclass]


if __name__ == "__main__":
    # Small synthetic graph: 64 nodes, 32 input features, 16 hidden, 8 classes.
    N, NFEAT, NHID, NCLASS = 64, 32, 16, 8
    DROPOUT = 0.5  # unused at inference (identity)

    key = jax.random.PRNGKey(0)
    k_x, k_adj, k1, k2, k3 = jax.random.split(key, 5)

    x = jax.random.normal(k_x, (N, NFEAT), jnp.float32)

    # Symmetric row-normalized adjacency with self-loops (dense stand-in for spmm).
    a = (jax.random.uniform(k_adj, (N, N)) > 0.8).astype(jnp.float32)
    a = jnp.maximum(a, a.T) + jnp.eye(N, dtype=jnp.float32)
    adj = a / jnp.sum(a, axis=1, keepdims=True)

    params = {
        "gc1": init_gc_params(k1, NFEAT, NHID),
        "gcx": init_gc_params(k2, NHID, NHID),
        "gc2": init_gc_params(k3, NHID, NCLASS),
    }

    out = jax.jit(gcn_forward)(x, adj, params)
    jax.block_until_ready(out)

    assert out.shape == (N, NCLASS)
    # log_softmax sanity: rows sum to ~1 in probability space.
    assert bool(jnp.all(jnp.abs(jnp.sum(jnp.exp(out), axis=1) - 1.0) < 1e-3))

    print("KERNEL_OK")
</pallas_src>

<mosaic_0001>
module attributes {stable_mosaic.version = 11 : i64} {
  func.func @gcn_fused_kernel(%arg0: memref<128x128xbf16, #tpu.memory_space<vmem>>, %arg1: memref<128x128xbf16, #tpu.memory_space<vmem>>, %arg2: memref<128x128xbf16, #tpu.memory_space<vmem>>, %arg3: memref<1x128xf32, #tpu.memory_space<vmem>>, %arg4: memref<128x128xbf16, #tpu.memory_space<vmem>>, %arg5: memref<1x128xf32, #tpu.memory_space<vmem>>, %arg6: memref<128x128xbf16, #tpu.memory_space<vmem>>, %arg7: memref<1x128xf32, #tpu.memory_space<vmem>>, %arg8: memref<128x128xf32, #tpu.memory_space<vmem>>) attributes {dimension_semantics = [], scalar_prefetch = 0 : i64, scratch_operands = 0 : i64, tpu.core_type = #tpu.core_type<tc>} {
    %c0 = arith.constant 0 : index
    %c0_0 = arith.constant 0 : index
    %0 = vector.load %arg1[%c0, %c0_0] : memref<128x128xbf16, #tpu.memory_space<vmem>>, vector<128x128xbf16>
    %c0_1 = arith.constant 0 : index
    %c0_2 = arith.constant 0 : index
    %1 = vector.load %arg4[%c0_1, %c0_2] : memref<128x128xbf16, #tpu.memory_space<vmem>>, vector<128x128xbf16>
    %c0_3 = arith.constant 0 : index
    %c0_4 = arith.constant 0 : index
    %2 = vector.load %arg3[%c0_3, %c0_4] : memref<1x128xf32, #tpu.memory_space<vmem>>, vector<1x128xf32>
    %3 = vector.shape_cast %2 : vector<1x128xf32> to vector<1x128xf32>
    %4 = vector.broadcast %3 : vector<1x128xf32> to vector<128x128xf32>
    %c0_5 = arith.constant 0 : index
    %c0_6 = arith.constant 0 : index
    %5 = vector.load %arg5[%c0_5, %c0_6] : memref<1x128xf32, #tpu.memory_space<vmem>>, vector<1x128xf32>
    %6 = vector.shape_cast %5 : vector<1x128xf32> to vector<1x128xf32>
    %7 = vector.broadcast %6 : vector<1x128xf32> to vector<128x128xf32>
    %c0_7 = arith.constant 0 : index
    %c0_8 = arith.constant 0 : index
    %8 = vector.load %arg7[%c0_7, %c0_8] : memref<1x128xf32, #tpu.memory_space<vmem>>, vector<1x128xf32>
    %9 = vector.shape_cast %8 : vector<1x128xf32> to vector<1x128xf32>
    %10 = vector.broadcast %9 : vector<1x128xf32> to vector<128x128xf32>
    %c0_9 = arith.constant 0 : index
    %c0_10 = arith.constant 0 : index
    %11 = vector.load %arg0[%c0_9, %c0_10] : memref<128x128xbf16, #tpu.memory_space<vmem>>, vector<128x128xbf16>
    %c0_11 = arith.constant 0 : index
    %c0_12 = arith.constant 0 : index
    %12 = vector.load %arg2[%c0_11, %c0_12] : memref<128x128xbf16, #tpu.memory_space<vmem>>, vector<128x128xbf16>
    %cst = arith.constant dense<0.000000e+00> : vector<128x128xf32>
    %13 = tpu.matmul %11, %12, %cst {dimension_numbers = #tpu.dot_dimension_numbers<[1], [0], [0], [1], [0, 0, 1, 1], [], []>} : vector<128x128xbf16>, vector<128x128xbf16>, vector<128x128xf32> -> vector<128x128xf32>
    %14 = arith.truncf %13 : vector<128x128xf32> to vector<128x128xbf16>
    %cst_13 = arith.constant dense<0.000000e+00> : vector<128x128xf32>
    %15 = tpu.matmul %0, %14, %cst_13 {dimension_numbers = #tpu.dot_dimension_numbers<[1], [0], [0], [1], [0, 0, 1, 1], [], []>} : vector<128x128xbf16>, vector<128x128xbf16>, vector<128x128xf32> -> vector<128x128xf32>
    %16 = arith.addf %15, %4 : vector<128x128xf32>
    %cst_14 = arith.constant 0.000000e+00 : f32
    %17 = vector.broadcast %cst_14 : f32 to vector<128x128xf32>
    %18 = arith.maximumf %16, %17 : vector<128x128xf32>
    %19 = arith.truncf %18 : vector<128x128xf32> to vector<128x128xbf16>
    %c0_i32 = arith.constant 0 : i32
    %cst_15 = arith.constant dense<0.000000e+00> : vector<128x128xf32>
    %20 = tpu.matmul %19, %1, %cst_15 {dimension_numbers = #tpu.dot_dimension_numbers<[1], [0], [0], [1], [0, 0, 1, 1], [], []>} : vector<128x128xbf16>, vector<128x128xbf16>, vector<128x128xf32> -> vector<128x128xf32>
    %21 = arith.truncf %20 : vector<128x128xf32> to vector<128x128xbf16>
    %cst_16 = arith.constant dense<0.000000e+00> : vector<128x128xf32>
    %22 = tpu.matmul %0, %21, %cst_16 {dimension_numbers = #tpu.dot_dimension_numbers<[1], [0], [0], [1], [0, 0, 1, 1], [], []>} : vector<128x128xbf16>, vector<128x128xbf16>, vector<128x128xf32> -> vector<128x128xf32>
    %23 = arith.addf %22, %7 : vector<128x128xf32>
    %cst_17 = arith.constant 0.000000e+00 : f32
    %24 = vector.broadcast %cst_17 : f32 to vector<128x128xf32>
    %25 = arith.maximumf %23, %24 : vector<128x128xf32>
    %26 = arith.truncf %25 : vector<128x128xf32> to vector<128x128xbf16>
    %c1_i32 = arith.constant 1 : i32
    %cst_18 = arith.constant dense<0.000000e+00> : vector<128x128xf32>
    %27 = tpu.matmul %26, %1, %cst_18 {dimension_numbers = #tpu.dot_dimension_numbers<[1], [0], [0], [1], [0, 0, 1, 1], [], []>} : vector<128x128xbf16>, vector<128x128xbf16>, vector<128x128xf32> -> vector<128x128xf32>
    %28 = arith.truncf %27 : vector<128x128xf32> to vector<128x128xbf16>
    %cst_19 = arith.constant dense<0.000000e+00> : vector<128x128xf32>
    %29 = tpu.matmul %0, %28, %cst_19 {dimension_numbers = #tpu.dot_dimension_numbers<[1], [0], [0], [1], [0, 0, 1, 1], [], []>} : vector<128x128xbf16>, vector<128x128xbf16>, vector<128x128xf32> -> vector<128x128xf32>
    %30 = arith.addf %29, %7 : vector<128x128xf32>
    %cst_20 = arith.constant 0.000000e+00 : f32
    %31 = vector.broadcast %cst_20 : f32 to vector<128x128xf32>
    %32 = arith.maximumf %30, %31 : vector<128x128xf32>
    %33 = arith.truncf %32 : vector<128x128xf32> to vector<128x128xbf16>
    %c2_i32 = arith.constant 2 : i32
    %cst_21 = arith.constant dense<0.000000e+00> : vector<128x128xf32>
    %34 = tpu.matmul %33, %1, %cst_21 {dimension_numbers = #tpu.dot_dimension_numbers<[1], [0], [0], [1], [0, 0, 1, 1], [], []>} : vector<128x128xbf16>, vector<128x128xbf16>, vector<128x128xf32> -> vector<128x128xf32>
    %35 = arith.truncf %34 : vector<128x128xf32> to vector<128x128xbf16>
    %cst_22 = arith.constant dense<0.000000e+00> : vector<128x128xf32>
    %36 = tpu.matmul %0, %35, %cst_22 {dimension_numbers = #tpu.dot_dimension_numbers<[1], [0], [0], [1], [0, 0, 1, 1], [], []>} : vector<128x128xbf16>, vector<128x128xbf16>, vector<128x128xf32> -> vector<128x128xf32>
    %37 = arith.addf %36, %7 : vector<128x128xf32>
    %cst_23 = arith.constant 0.000000e+00 : f32
    %38 = vector.broadcast %cst_23 : f32 to vector<128x128xf32>
    %39 = arith.maximumf %37, %38 : vector<128x128xf32>
    %40 = arith.truncf %39 : vector<128x128xf32> to vector<128x128xbf16>
    %c3_i32 = arith.constant 3 : i32
    %cst_24 = arith.constant dense<0.000000e+00> : vector<128x128xf32>
    %41 = tpu.matmul %40, %1, %cst_24 {dimension_numbers = #tpu.dot_dimension_numbers<[1], [0], [0], [1], [0, 0, 1, 1], [], []>} : vector<128x128xbf16>, vector<128x128xbf16>, vector<128x128xf32> -> vector<128x128xf32>
    %42 = arith.truncf %41 : vector<128x128xf32> to vector<128x128xbf16>
    %cst_25 = arith.constant dense<0.000000e+00> : vector<128x128xf32>
    %43 = tpu.matmul %0, %42, %cst_25 {dimension_numbers = #tpu.dot_dimension_numbers<[1], [0], [0], [1], [0, 0, 1, 1], [], []>} : vector<128x128xbf16>, vector<128x128xbf16>, vector<128x128xf32> -> vector<128x128xf32>
    %44 = arith.addf %43, %7 : vector<128x128xf32>
    %cst_26 = arith.constant 0.000000e+00 : f32
    %45 = vector.broadcast %cst_26 : f32 to vector<128x128xf32>
    %46 = arith.maximumf %44, %45 : vector<128x128xf32>
    %47 = arith.truncf %46 : vector<128x128xf32> to vector<128x128xbf16>
    %c4_i32 = arith.constant 4 : i32
    %cst_27 = arith.constant dense<0.000000e+00> : vector<128x128xf32>
    %48 = tpu.matmul %47, %1, %cst_27 {dimension_numbers = #tpu.dot_dimension_numbers<[1], [0], [0], [1], [0, 0, 1, 1], [], []>} : vector<128x128xbf16>, vector<128x128xbf16>, vector<128x128xf32> -> vector<128x128xf32>
    %49 = arith.truncf %48 : vector<128x128xf32> to vector<128x128xbf16>
    %cst_28 = arith.constant dense<0.000000e+00> : vector<128x128xf32>
    %50 = tpu.matmul %0, %49, %cst_28 {dimension_numbers = #tpu.dot_dimension_numbers<[1], [0], [0], [1], [0, 0, 1, 1], [], []>} : vector<128x128xbf16>, vector<128x128xbf16>, vector<128x128xf32> -> vector<128x128xf32>
    %51 = arith.addf %50, %7 : vector<128x128xf32>
    %cst_29 = arith.constant 0.000000e+00 : f32
    %52 = vector.broadcast %cst_29 : f32 to vector<128x128xf32>
    %53 = arith.maximumf %51, %52 : vector<128x128xf32>
    %54 = arith.truncf %53 : vector<128x128xf32> to vector<128x128xbf16>
    %c5_i32 = arith.constant 5 : i32
    %cst_30 = arith.constant dense<0.000000e+00> : vector<128x128xf32>
    %55 = tpu.matmul %54, %1, %cst_30 {dimension_numbers = #tpu.dot_dimension_numbers<[1], [0], [0], [1], [0, 0, 1, 1], [], []>} : vector<128x128xbf16>, vector<128x128xbf16>, vector<128x128xf32> -> vector<128x128xf32>
    %56 = arith.truncf %55 : vector<128x128xf32> to vector<128x128xbf16>
    %cst_31 = arith.constant dense<0.000000e+00> : vector<128x128xf32>
    %57 = tpu.matmul %0, %56, %cst_31 {dimension_numbers = #tpu.dot_dimension_numbers<[1], [0], [0], [1], [0, 0, 1, 1], [], []>} : vector<128x128xbf16>, vector<128x128xbf16>, vector<128x128xf32> -> vector<128x128xf32>
    %58 = arith.addf %57, %7 : vector<128x128xf32>
    %cst_32 = arith.constant 0.000000e+00 : f32
    %59 = vector.broadcast %cst_32 : f32 to vector<128x128xf32>
    %60 = arith.maximumf %58, %59 : vector<128x128xf32>
    %61 = arith.truncf %60 : vector<128x128xf32> to vector<128x128xbf16>
    %c6_i32 = arith.constant 6 : i32
    %cst_33 = arith.constant dense<0.000000e+00> : vector<128x128xf32>
    %62 = tpu.matmul %61, %1, %cst_33 {dimension_numbers = #tpu.dot_dimension_numbers<[1], [0], [0], [1], [0, 0, 1, 1], [], []>} : vector<128x128xbf16>, vector<128x128xbf16>, vector<128x128xf32> -> vector<128x128xf32>
    %63 = arith.truncf %62 : vector<128x128xf32> to vector<128x128xbf16>
    %cst_34 = arith.constant dense<0.000000e+00> : vector<128x128xf32>
    %64 = tpu.matmul %0, %63, %cst_34 {dimension_numbers = #tpu.dot_dimension_numbers<[1], [0], [0], [1], [0, 0, 1, 1], [], []>} : vector<128x128xbf16>, vector<128x128xbf16>, vector<128x128xf32> -> vector<128x128xf32>
    %65 = arith.addf %64, %7 : vector<128x128xf32>
    %cst_35 = arith.constant 0.000000e+00 : f32
    %66 = vector.broadcast %cst_35 : f32 to vector<128x128xf32>
    %67 = arith.maximumf %65, %66 : vector<128x128xf32>
    %68 = arith.truncf %67 : vector<128x128xf32> to vector<128x128xbf16>
    %c7_i32 = arith.constant 7 : i32
    %cst_36 = arith.constant dense<0.000000e+00> : vector<128x128xf32>
    %69 = tpu.matmul %68, %1, %cst_36 {dimension_numbers = #tpu.dot_dimension_numbers<[1], [0], [0], [1], [0, 0, 1, 1], [], []>} : vector<128x128xbf16>, vector<128x128xbf16>, vector<128x128xf32> -> vector<128x128xf32>
    %70 = arith.truncf %69 : vector<128x128xf32> to vector<128x128xbf16>
    %cst_37 = arith.constant dense<0.000000e+00> : vector<128x128xf32>
    %71 = tpu.matmul %0, %70, %cst_37 {dimension_numbers = #tpu.dot_dimension_numbers<[1], [0], [0], [1], [0, 0, 1, 1], [], []>} : vector<128x128xbf16>, vector<128x128xbf16>, vector<128x128xf32> -> vector<128x128xf32>
    %72 = arith.addf %71, %7 : vector<128x128xf32>
    %cst_38 = arith.constant 0.000000e+00 : f32
    %73 = vector.broadcast %cst_38 : f32 to vector<128x128xf32>
    %74 = arith.maximumf %72, %73 : vector<128x128xf32>
    %75 = arith.truncf %74 : vector<128x128xf32> to vector<128x128xbf16>
    %c0_39 = arith.constant 0 : index
    %c0_40 = arith.constant 0 : index
    %76 = vector.load %arg6[%c0_39, %c0_40] : memref<128x128xbf16, #tpu.memory_space<vmem>>, vector<128x128xbf16>
    %cst_41 = arith.constant dense<0.000000e+00> : vector<128x128xf32>
    %77 = tpu.matmul %75, %76, %cst_41 {dimension_numbers = #tpu.dot_dimension_numbers<[1], [0], [0], [1], [0, 0, 1, 1], [], []>} : vector<128x128xbf16>, vector<128x128xbf16>, vector<128x128xf32> -> vector<128x128xf32>
    %78 = arith.truncf %77 : vector<128x128xf32> to vector<128x128xbf16>
    %cst_42 = arith.constant dense<0.000000e+00> : vector<128x128xf32>
    %79 = tpu.matmul %0, %78, %cst_42 {dimension_numbers = #tpu.dot_dimension_numbers<[1], [0], [0], [1], [0, 0, 1, 1], [], []>} : vector<128x128xbf16>, vector<128x128xbf16>, vector<128x128xf32> -> vector<128x128xf32>
    %80 = arith.addf %79, %10 : vector<128x128xf32>
    %81 = tpu.iota {dimensions = array<i32: 1>} : vector<128x128xi32>
    %c8_i32 = arith.constant 8 : i32
    %82 = vector.broadcast %c8_i32 : i32 to vector<128x128xi32>
    %83 = arith.cmpi slt, %81, %82 : vector<128x128xi32>
    %cst_43 = arith.constant -1.000000e+30 : f32
    %84 = vector.broadcast %cst_43 : f32 to vector<128x128xf32>
    %85 = arith.select %83, %80, %84 : vector<128x128xi1>, vector<128x128xf32>
    %cst_44 = arith.constant dense<0xFF800000> : vector<128xf32>
    %86 = vector.multi_reduction <maximumf>, %85, %cst_44 [1] : vector<128x128xf32> to vector<128xf32>
    %87 = vector.shape_cast %86 : vector<128xf32> to vector<128x1xf32>
    %88 = vector.broadcast %87 : vector<128x1xf32> to vector<128x128xf32>
    %89 = arith.subf %85, %88 : vector<128x128xf32>
    %90 = math.exp %89 : vector<128x128xf32>
    %cst_45 = arith.constant dense<0.000000e+00> : vector<128xf32>
    %91 = vector.multi_reduction <add>, %90, %cst_45 [1] : vector<128x128xf32> to vector<128xf32>
    %92 = vector.shape_cast %91 : vector<128xf32> to vector<128x1xf32>
    %93 = math.log %92 : vector<128x1xf32>
    %94 = vector.broadcast %93 : vector<128x1xf32> to vector<128x128xf32>
    %95 = arith.subf %89, %94 : vector<128x128xf32>
    %c0_46 = arith.constant 0 : index
    %c0_47 = arith.constant 0 : index
    %96 = vector.load %arg8[%c0_46, %c0_47] : memref<128x128xf32, #tpu.memory_space<vmem>>, vector<128x128xf32>
    tpu.vector_store %arg8[%c0_46, %c0_47], %95 {strides = array<i32>} : memref<128x128xf32, #tpu.memory_space<vmem>>, vector<128x128xf32>,
    return
  }
}

</mosaic_0001>

<bundles_post_ra>
// kernel: gcn_forward.1
= control target key start
LH: loop header
LB: loop body
LE: loop exit
PB: predicated region body
PF: predicated region fallthrough
CT: control target
= control target key end

     0   :  { %s2880_s2 = inlined_call_operand.vmem [shape: bf16[128,128], index: 2, kind: input, shape index: {}]   ;;  %s2881_s0 = inlined_call_operand.vmem [shape: bf16[128,128], index: 0, kind: input, shape index: {}]   ;;  %s2882_s3 = inlined_call_operand.vmem [shape: f32[1,128], index: 3, kind: input, shape index: {}]   ;;  %s2883_s1 = inlined_call_operand.vmem [shape: bf16[128,128], index: 1, kind: input, shape index: {}]   ;;  %s2884_s4 = inlined_call_operand.vmem [shape: bf16[128,128], index: 4, kind: input, shape index: {}]   ;;  %s2885_s5 = inlined_call_operand.vmem [shape: f32[1,128], index: 5, kind: input, shape index: {}]   ;;  %s2886_s6 = inlined_call_operand.vmem [shape: bf16[128,128], index: 6, kind: input, shape index: {}]   ;;  %s2887_s7 = inlined_call_operand.vmem [shape: f32[1,128], index: 7, kind: input, shape index: {}]   ;;  %s2888_s8 = inlined_call_operand.vmem [shape: f32[128,128], index: 8, kind: output, shape index: {}]  }
   0x1   :  { %v2027_v0 = vld [vmem:[%s2880_s2 + $0x38] sm:$0xff]  ;;  %v2026_v1 = vld [vmem:[%s2880_s2 + $0x30] sm:$0xff]  ;;  %v2025_v2 = vld [vmem:[%s2880_s2 + $0x28] sm:$0xff] }
   0x2   :  { %201 = vmatpush.bf16.msra.mxu0 %v2027_v0  ;;  %v2024_v3 = vld [vmem:[%s2880_s2 + $0x20] sm:$0xff]  ;;  %v2023_v4 = vld [vmem:[%s2880_s2 + $0x18] sm:$0xff]  ;;  %v2022_v5 = vld [vmem:[%s2880_s2 + $0x10] sm:$0xff] }
   0x3   :  { %v2021_v6 = vld [vmem:[%s2880_s2 + $0x8] sm:$0xff]  ;;  %v2020_v7 = vld [vmem:[%s2880_s2] sm:$0xff]  ;;  %v2014_v10 = vld [vmem:[%s2881_s0 + $0x10] sm:$0xff] }
   0x4   :  { %v2012_v8 = vld [vmem:[%s2881_s0] sm:$0xff]  ;;  %v2013_v9 = vld [vmem:[%s2881_s0 + $0x8] sm:$0xff]  ;;  %v2015_v11 = vld [vmem:[%s2881_s0 + $0x18] sm:$0xff] }
   0x5   :  { %v2016_v12 = vld [vmem:[%s2881_s0 + $0x20] sm:$0xff]  ;;  %v2017_v13 = vld [vmem:[%s2881_s0 + $0x28] sm:$0xff]  ;;  %v2018_v14 = vld [vmem:[%s2881_s0 + $0x30] sm:$0xff] }
   0x6   :  { %202 = vmatpush.bf16.msra.mxu0 %v2026_v1  ;;  %v2019_v15 = vld [vmem:[%s2881_s0 + $0x38] sm:$0xff]  ;;  %v2208_v40 = vld [vmem:[%s2883_s1] sm:$0xff]  ;;  %v2214_v41 = vld [vmem:[%s2883_s1 + $0x8] sm:$0xff] }
   0x7   :  { %v2220_v42 = vld [vmem:[%s2883_s1 + $0x10] sm:$0xff]  ;;  %v2226_v43 = vld [vmem:[%s2883_s1 + $0x18] sm:$0xff]  ;;  %v2232_v44 = vld [vmem:[%s2883_s1 + $0x20] sm:$0xff] }
   0x8   :  { %v2238_v45 = vld [vmem:[%s2884_s4 + $0x38] sm:$0xff]  ;;  %v2245_v46 = vld [vmem:[%s2883_s1 + $0x28] sm:$0xff]  ;;  %v2250_v47 = vld [vmem:[%s2884_s4 + $0x30] sm:$0xff] }
   0x9   :  { %427 = vmatpush.bf16.msra.mxu2 %v2238_v45  ;;  %v2257_v48 = vld [vmem:[%s2884_s4 + $0x28] sm:$0xff]  ;;  %v2264_v49 = vld [vmem:[%s2884_s4 + $0x20] sm:$0xff]  ;;  %v2272_v50 = vld [vmem:[%s2884_s4 + $0x18] sm:$0xff] }
   0xa   :  { %203 = vmatpush.bf16.msra.mxu0 %v2025_v2  ;;  %v2277_v51 = vld [vmem:[%s2883_s1 + $0x30] sm:$0xff]  ;;  %v2292_v53 = vld [vmem:[%s2884_s4 + $0x8] sm:$0xff]  ;;  %v2299_v54 = vld [vmem:[%s2884_s4] sm:$0xff] }
   0xb   :  { %v2284_v52 = vld [vmem:[%s2884_s4 + $0x10] sm:$0xff]  ;;  %v2308_v55 = vld [vmem:[%s2883_s1 + $0x38] sm:$0xff]  ;;  %v2324_v57 = vld [vmem:[%s2882_s3] ss:$0 sm:$0xff] }
   0xd   :  { %428 = vmatpush.bf16.msra.mxu2 %v2250_v47 }
   0xe   :  { %204 = vmatpush.bf16.msra.mxu0 %v2024_v3 }
  0x11   :  { %429 = vmatpush.bf16.msra.mxu2 %v2257_v48 }
  0x12   :  { %205 = vmatpush.bf16.msra.mxu0 %v2023_v4 }
  0x15   :  { %430 = vmatpush.bf16.msra.mxu2 %v2264_v49 }
  0x16   :  { %206 = vmatpush.bf16.msra.mxu0 %v2022_v5 }
  0x19   :  { %431 = vmatpush.bf16.msra.mxu2 %v2272_v50 }
  0x1a   :  { %207 = vmatpush.bf16.msra.mxu0 %v2021_v6 }
  0x1d   :  { %432 = vmatpush.bf16.msra.mxu2 %v2284_v52 }
  0x1e   :  { %208 = vmatpush.bf16.msra.mxu0 %v2020_v7 }
  0x21   :  { %209 = vmatmul.bf16.vlgmr.msra.gmra.mxu0 %v2012_v8  ;;  %433 = vmatpush.bf16.msra.mxu2 %v2292_v53 }
  0x22   :  { %557 = vmatpush.bf16.msrb.mxu0 %v2238_v45 }
  0x25   :  { %434 = vmatpush.bf16.msra.mxu2 %v2299_v54 }
  0x26   :  { %558 = vmatpush.bf16.msrb.mxu0 %v2250_v47 }
  0x29   :  { %687 = vmatpush.bf16.msrb.mxu2 %v2238_v45 }
  0x2a   :  { %559 = vmatpush.bf16.msrb.mxu0 %v2257_v48 }
  0x2d   :  { %688 = vmatpush.bf16.msrb.mxu2 %v2250_v47 }
  0x2e   :  { %560 = vmatpush.bf16.msrb.mxu0 %v2264_v49 }
  0x31   :  { %214 = vmatmul.bf16.gmra.mxu0 %v2013_v9  ;;  %689 = vmatpush.bf16.msrb.mxu2 %v2257_v48 }
  0x32   :  { %561 = vmatpush.bf16.msrb.mxu0 %v2272_v50 }
  0x35   :  { %690 = vmatpush.bf16.msrb.mxu2 %v2264_v49 }
  0x36   :  { %562 = vmatpush.bf16.msrb.mxu0 %v2284_v52 }
  0x39   :  { %691 = vmatpush.bf16.msrb.mxu2 %v2272_v50 }
  0x3a   :  { %563 = vmatpush.bf16.msrb.mxu0 %v2292_v53 }
  0x3d   :  { %692 = vmatpush.bf16.msrb.mxu2 %v2284_v52 }
  0x3e   :  { %564 = vmatpush.bf16.msrb.mxu0 %v2299_v54 }
  0x41   :  { %219 = vmatmul.bf16.gmra.mxu0 %v2014_v10  ;;  %693 = vmatpush.bf16.msrb.mxu2 %v2292_v53 }
  0x42   :  { %817 = vmatpush.bf16.msra.mxu0 %v2238_v45 }
  0x45   :  { %694 = vmatpush.bf16.msrb.mxu2 %v2299_v54 }
  0x46   :  { %818 = vmatpush.bf16.msra.mxu0 %v2250_v47 }
  0x4a   :  { %819 = vmatpush.bf16.msra.mxu0 %v2257_v48 }
  0x4e   :  { %820 = vmatpush.bf16.msra.mxu0 %v2264_v49 }
  0x51   :  { %224 = vmatmul.bf16.gmra.mxu0 %v2015_v11 }
  0x52   :  { %821 = vmatpush.bf16.msra.mxu0 %v2272_v50 }
  0x56   :  { %822 = vmatpush.bf16.msra.mxu0 %v2284_v52 }
  0x5a   :  { %823 = vmatpush.bf16.msra.mxu0 %v2292_v53 }
  0x5e   :  { %824 = vmatpush.bf16.msra.mxu0 %v2299_v54 }
  0x61   :  { %229 = vmatmul.bf16.gmra.mxu0 %v2016_v12 }
  0x71   :  { %234 = vmatmul.bf16.gmra.mxu0 %v2017_v13 }
  0x81   :  { %239 = vmatmul.bf16.gmra.mxu0 %v2018_v14 }
  0x91   :  { %244 = vmatmul.bf16.gmra.mxu0 %v2019_v15 }
  0x9e   :  { %v210_v16 = vpop.f32.mrf.mxu0 }
  0xa6   :  { %v212_v17 = vpop.f32.mrf.mxu0 }
  0xa7   :  { %v250_v39 = vpack.c.bf16 %v212_v17, %v210_v16 }
  0xae   :  { %v215_v18 = vpop.f32.mrf.mxu0 }
  0xb6   :  { %v217_v19 = vpop.f32.mrf.mxu0 }
  0xb7   :  { %v251_v38 = vpack.c.bf16 %v217_v19, %v215_v18 }
  0xbe   :  { %v220_v20 = vpop.f32.mrf.mxu0 }
  0xc6   :  { %v222_v21 = vpop.f32.mrf.mxu0 }
  0xc7   :  { %v252_v37 = vpack.c.bf16 %v222_v21, %v220_v20 }
  0xce   :  { %v225_v22 = vpop.f32.mrf.mxu0 }
  0xd6   :  { %v227_v23 = vpop.f32.mrf.mxu0 }
  0xd7   :  { %v253_v36 = vpack.c.bf16 %v227_v23, %v225_v22 }
  0xde   :  { %v230_v24 = vpop.f32.mrf.mxu0 }
  0xe6   :  { %v232_v25 = vpop.f32.mrf.mxu0 }
  0xe7   :  { %v254_v35 = vpack.c.bf16 %v232_v25, %v230_v24 }
  0xee   :  { %v235_v26 = vpop.f32.mrf.mxu0 }
  0xf6   :  { %v237_v27 = vpop.f32.mrf.mxu0 }
  0xf7   :  { %v255_v34 = vpack.c.bf16 %v237_v27, %v235_v26 }
  0xfe   :  { %v240_v28 = vpop.f32.mrf.mxu0 }
 0x106   :  { %v242_v29 = vpop.f32.mrf.mxu0 }
 0x107   :  { %v256_v33 = vpack.c.bf16 %v242_v29, %v240_v28 }
 0x10e   :  { %v245_v30 = vpop.f32.mrf.mxu0 }
 0x116   :  { %v247_v31 = vpop.f32.mrf.mxu0 }
 0x117   :  { %v257_v32 = vpack.c.bf16 %v247_v31, %v245_v30 }
 0x119   :  { %306 = vmatpush.bf16.msra.mxu1 %v257_v32 }
 0x11d   :  { %307 = vmatpush.bf16.msra.mxu1 %v256_v33 }
 0x121   :  { %308 = vmatpush.bf16.msra.mxu1 %v255_v34 }
 0x125   :  { %309 = vmatpush.bf16.msra.mxu1 %v254_v35 }
 0x129   :  { %310 = vmatpush.bf16.msra.mxu1 %v253_v36 }
 0x12d   :  { %311 = vmatpush.bf16.msra.mxu1 %v252_v37 }
 0x131   :  { %312 = vmatpush.bf16.msra.mxu1 %v251_v38 }
 0x135   :  { %313 = vmatpush.bf16.msra.mxu1 %v250_v39 }
 0x138   :  { %314 = vmatmul.bf16.vlgmr.msra.gmra.mxu1 %v2208_v40 }
 0x148   :  { %319 = vmatmul.bf16.gmra.mxu1 %v2214_v41 }
 0x158   :  { %324 = vmatmul.bf16.gmra.mxu1 %v2220_v42 }
 0x168   :  { %329 = vmatmul.bf16.gmra.mxu1 %v2226_v43 }
 0x178   :  { %334 = vmatmul.bf16.gmra.mxu1 %v2232_v44 }
 0x188   :  { %339 = vmatmul.bf16.gmra.mxu1 %v2245_v46 }
 0x198   :  { %344 = vmatmul.bf16.gmra.mxu1 %v2277_v51 }
 0x1a8   :  { %349 = vmatmul.bf16.gmra.mxu1 %v2308_v55 }
 0x1b5   :  { %v315_v56 = vpop.f32.mrf.mxu1 }
 0x1b6   :  { %v316_v58 = vadd.f32 %v2324_v57, %v315_v56 }
 0x1b8   :  { %v355_v61 = vmax.f32 %v316_v58, 0.0 }
 0x1bd   :  { %v317_v59 = vpop.f32.mrf.mxu1 }
 0x1be   :  { %v318_v60 = vadd.f32 %v2324_v57, %v317_v59 }
 0x1c0   :  { %v356_v62 = vmax.f32 %v318_v60, 0.0 }
 0x1c2   :  { %v371_v63 = vpack.c.bf16 %v356_v62, %v355_v61 }
 0x1c4   :  { %435 = vmatmul.bf16.vlgmr.msra.gmra.mxu2 %v371_v63 }
 0x1c5   :  { %v320_v0 = vpop.f32.mrf.mxu1  ;;  %947 = vmatpush.bf16.msra.mxu2 %v2238_v45 }
 0x1c6   :  { %v321_v1 = vadd.f32 %v2324_v57, %v320_v0 }
 0x1c8   :  { %v357_v4 = vmax.f32 %v321_v1, 0.0 }
 0x1c9   :  { %948 = vmatpush.bf16.msra.mxu2 %v2250_v47 }
 0x1cd   :  { %v322_v2 = vpop.f32.mrf.mxu1  ;;  %949 = vmatpush.bf16.msra.mxu2 %v2257_v48 }
 0x1ce   :  { %v323_v3 = vadd.f32 %v2324_v57, %v322_v2 }
 0x1d0   :  { %v358_v5 = vmax.f32 %v323_v3, 0.0 }
 0x1d1   :  { %950 = vmatpush.bf16.msra.mxu2 %v2264_v49 }
 0x1d2   :  { %v372_v6 = vpack.c.bf16 %v358_v5, %v357_v4 }
 0x1d4   :  { %440 = vmatmul.bf16.gmra.mxu2 %v372_v6 }
 0x1d5   :  { %v325_v7 = vpop.f32.mrf.mxu1  ;;  %951 = vmatpush.bf16.msra.mxu2 %v2272_v50 }
 0x1d6   :  { %v326_v8 = vadd.f32 %v2324_v57, %v325_v7 }
 0x1d8   :  { %v359_v11 = vmax.f32 %v326_v8, 0.0 }
 0x1d9   :  { %952 = vmatpush.bf16.msra.mxu2 %v2284_v52 }
 0x1dd   :  { %v327_v9 = vpop.f32.mrf.mxu1  ;;  %953 = vmatpush.bf16.msra.mxu2 %v2292_v53 }
 0x1de   :  { %v328_v10 = vadd.f32 %v2324_v57, %v327_v9 }
 0x1e0   :  { %v360_v12 = vmax.f32 %v328_v10, 0.0 }
 0x1e1   :  { %954 = vmatpush.bf16.msra.mxu2 %v2299_v54 }
 0x1e2   :  { %v373_v13 = vpack.c.bf16 %v360_v12, %v359_v11 }
 0x1e4   :  { %445 = vmatmul.bf16.gmra.mxu2 %v373_v13 }
 0x1e5   :  { %v330_v14 = vpop.f32.mrf.mxu1 }
 0x1e6   :  { %v331_v15 = vadd.f32 %v2324_v57, %v330_v14 }
 0x1e8   :  { %v361_v18 = vmax.f32 %v331_v15, 0.0 }
 0x1ed   :  { %v332_v16 = vpop.f32.mrf.mxu1 }
 0x1ee   :  { %v333_v17 = vadd.f32 %v2324_v57, %v332_v16 }
 0x1f0   :  { %v362_v19 = vmax.f32 %v333_v17, 0.0 }
 0x1f2   :  { %v374_v20 = vpack.c.bf16 %v362_v19, %v361_v18 }
 0x1f4   :  { %450 = vmatmul.bf16.gmra.mxu2 %v374_v20 }
 0x1f5   :  { %v335_v21 = vpop.f32.mrf.mxu1 }
 0x1f6   :  { %v336_v22 = vadd.f32 %v2324_v57, %v335_v21 }
 0x1f8   :  { %v363_v25 = vmax.f32 %v336_v22, 0.0 }
 0x1fd   :  { %v337_v23 = vpop.f32.mrf.mxu1 }
 0x1fe   :  { %v338_v24 = vadd.f32 %v2324_v57, %v337_v23 }
 0x200   :  { %v364_v26 = vmax.f32 %v338_v24, 0.0 }
 0x202   :  { %v375_v27 = vpack.c.bf16 %v364_v26, %v363_v25  ;;  %v2365_v26 = vld [vmem:[%s2885_s5] ss:$0 sm:$0xff] }
 0x204   :  { %455 = vmatmul.bf16.gmra.mxu2 %v375_v27 }
 0x205   :  { %v340_v28 = vpop.f32.mrf.mxu1 }
 0x206   :  { %v341_v29 = vadd.f32 %v2324_v57, %v340_v28 }
 0x208   :  { %v365_v32 = vmax.f32 %v341_v29, 0.0 }
 0x20d   :  { %v342_v30 = vpop.f32.mrf.mxu1 }
 0x20e   :  { %v343_v31 = vadd.f32 %v2324_v57, %v342_v30 }
 0x210   :  { %v366_v33 = vmax.f32 %v343_v31, 0.0 }
 0x212   :  { %v376_v34 = vpack.c.bf16 %v366_v33, %v365_v32 }
 0x214   :  { %460 = vmatmul.bf16.gmra.mxu2 %v376_v34 }
 0x215   :  { %v345_v35 = vpop.f32.mrf.mxu1 }
 0x216   :  { %v346_v36 = vadd.f32 %v2324_v57, %v345_v35 }
 0x218   :  { %v367_v39 = vmax.f32 %v346_v36, 0.0 }
 0x21d   :  { %v347_v37 = vpop.f32.mrf.mxu1 }
 0x21e   :  { %v348_v38 = vadd.f32 %v2324_v57, %v347_v37 }
 0x220   :  { %v368_v56 = vmax.f32 %v348_v38, 0.0 }
 0x222   :  { %v377_v58 = vpack.c.bf16 %v368_v56, %v367_v39 }
 0x224   :  { %465 = vmatmul.bf16.gmra.mxu2 %v377_v58 }
 0x225   :  { %v350_v59 = vpop.f32.mrf.mxu1 }
 0x226   :  { %v351_v60 = vadd.f32 %v2324_v57, %v350_v59 }
 0x228   :  { %v369_v63 = vmax.f32 %v351_v60, 0.0 }
 0x22d   :  { %v352_v61 = vpop.f32.mrf.mxu1 }
 0x22e   :  { %v353_v62 = vadd.f32 %v2324_v57, %v352_v61 }
 0x230   :  { %v370_v0 = vmax.f32 %v353_v62, 0.0 }
 0x232   :  { %v378_v1 = vpack.c.bf16 %v370_v0, %v369_v63 }
 0x234   :  { %470 = vmatmul.bf16.gmra.mxu2 %v378_v1 }
 0x247   :  { %v436_v2 = vpop.f32.mrf.mxu2 }
 0x24f   :  { %v438_v3 = vpop.f32.mrf.mxu2 }
 0x250   :  { %v476_v24 = vpack.c.bf16 %v438_v3, %v436_v2 }
 0x257   :  { %v441_v4 = vpop.f32.mrf.mxu2 }
 0x25f   :  { %v443_v5 = vpop.f32.mrf.mxu2 }
 0x260   :  { %v477_v23 = vpack.c.bf16 %v443_v5, %v441_v4 }
 0x267   :  { %v446_v6 = vpop.f32.mrf.mxu2 }
 0x26f   :  { %v448_v7 = vpop.f32.mrf.mxu2 }
 0x270   :  { %v478_v22 = vpack.c.bf16 %v448_v7, %v446_v6 }
 0x277   :  { %v451_v8 = vpop.f32.mrf.mxu2 }
 0x27f   :  { %v453_v9 = vpop.f32.mrf.mxu2 }
 0x280   :  { %v479_v21 = vpack.c.bf16 %v453_v9, %v451_v8 }
 0x287   :  { %v456_v10 = vpop.f32.mrf.mxu2 }
 0x28f   :  { %v458_v11 = vpop.f32.mrf.mxu2 }
 0x290   :  { %v480_v20 = vpack.c.bf16 %v458_v11, %v456_v10 }
 0x297   :  { %v461_v12 = vpop.f32.mrf.mxu2 }
 0x29f   :  { %v463_v13 = vpop.f32.mrf.mxu2 }
 0x2a0   :  { %v481_v19 = vpack.c.bf16 %v463_v13, %v461_v12 }
 0x2a7   :  { %v466_v14 = vpop.f32.mrf.mxu2 }
 0x2af   :  { %v468_v15 = vpop.f32.mrf.mxu2 }
 0x2b0   :  { %v482_v18 = vpack.c.bf16 %v468_v15, %v466_v14 }
 0x2b7   :  { %v471_v16 = vpop.f32.mrf.mxu2 }
 0x2bf   :  { %v473_v57 = vpop.f32.mrf.mxu2 }
 0x2c0   :  { %v483_v17 = vpack.c.bf16 %v473_v57, %v471_v16 }
 0x2c2   :  { %484 = vmatpush.bf16.msra.mxu3 %v483_v17 }
 0x2c6   :  { %485 = vmatpush.bf16.msra.mxu3 %v482_v18 }
 0x2ca   :  { %486 = vmatpush.bf16.msra.mxu3 %v481_v19 }
 0x2ce   :  { %487 = vmatpush.bf16.msra.mxu3 %v480_v20 }
 0x2d2   :  { %488 = vmatpush.bf16.msra.mxu3 %v479_v21 }
 0x2d6   :  { %489 = vmatpush.bf16.msra.mxu3 %v478_v22 }
 0x2da   :  { %490 = vmatpush.bf16.msra.mxu3 %v477_v23 }
 0x2de   :  { %491 = vmatpush.bf16.msra.mxu3 %v476_v24 }
 0x2e1   :  { %492 = vmatmul.bf16.vlgmr.msra.gmra.mxu3 %v2208_v40 }
 0x2f1   :  { %497 = vmatmul.bf16.gmra.mxu3 %v2214_v41 }
 0x301   :  { %502 = vmatmul.bf16.gmra.mxu3 %v2220_v42 }
 0x311   :  { %507 = vmatmul.bf16.gmra.mxu3 %v2226_v43 }
 0x321   :  { %512 = vmatmul.bf16.gmra.mxu3 %v2232_v44 }
 0x331   :  { %517 = vmatmul.bf16.gmra.mxu3 %v2245_v46 }
 0x341   :  { %522 = vmatmul.bf16.gmra.mxu3 %v2277_v51 }
 0x351   :  { %527 = vmatmul.bf16.gmra.mxu3 %v2308_v55 }
 0x364   :  { %v493_v25 = vpop.f32.mrf.mxu3 }
 0x365   :  { %v494_v27 = vadd.f32 %v2365_v26, %v493_v25 }
 0x367   :  { %v533_v30 = vmax.f32 %v494_v27, 0.0 }
 0x36c   :  { %v495_v28 = vpop.f32.mrf.mxu3 }
 0x36d   :  { %v496_v29 = vadd.f32 %v2365_v26, %v495_v28 }
 0x36f   :  { %v534_v31 = vmax.f32 %v496_v29, 0.0 }
 0x371   :  { %v549_v32 = vpack.c.bf16 %v534_v31, %v533_v30 }
 0x373   :  { %565 = vmatmul.bf16.vlgmr.msrb.gmra.mxu0 %v549_v32 }
 0x374   :  { %v498_v33 = vpop.f32.mrf.mxu3  ;;  %1077 = vmatpush.bf16.msrb.mxu0 %v2238_v45 }
 0x375   :  { %v499_v34 = vadd.f32 %v2365_v26, %v498_v33 }
 0x377   :  { %v535_v37 = vmax.f32 %v499_v34, 0.0 }
 0x378   :  { %1078 = vmatpush.bf16.msrb.mxu0 %v2250_v47 }
 0x37c   :  { %v500_v35 = vpop.f32.mrf.mxu3  ;;  %1079 = vmatpush.bf16.msrb.mxu0 %v2257_v48 }
 0x37d   :  { %v501_v36 = vadd.f32 %v2365_v26, %v500_v35 }
 0x37f   :  { %v536_v38 = vmax.f32 %v501_v36, 0.0 }
 0x380   :  { %1080 = vmatpush.bf16.msrb.mxu0 %v2264_v49 }
 0x381   :  { %v550_v39 = vpack.c.bf16 %v536_v38, %v535_v37 }
 0x383   :  { %570 = vmatmul.bf16.gmra.mxu0 %v550_v39 }
 0x384   :  { %v503_v56 = vpop.f32.mrf.mxu3  ;;  %1081 = vmatpush.bf16.msrb.mxu0 %v2272_v50 }
 0x385   :  { %v504_v58 = vadd.f32 %v2365_v26, %v503_v56 }
 0x387   :  { %v537_v61 = vmax.f32 %v504_v58, 0.0 }
 0x388   :  { %1082 = vmatpush.bf16.msrb.mxu0 %v2284_v52 }
 0x38c   :  { %v505_v59 = vpop.f32.mrf.mxu3  ;;  %1083 = vmatpush.bf16.msrb.mxu0 %v2292_v53 }
 0x38d   :  { %v506_v60 = vadd.f32 %v2365_v26, %v505_v59 }
 0x38f   :  { %v538_v62 = vmax.f32 %v506_v60, 0.0 }
 0x390   :  { %1084 = vmatpush.bf16.msrb.mxu0 %v2299_v54 }
 0x391   :  { %v551_v63 = vpack.c.bf16 %v538_v62, %v537_v61 }
 0x393   :  { %575 = vmatmul.bf16.gmra.mxu0 %v551_v63 }
 0x394   :  { %v508_v0 = vpop.f32.mrf.mxu3 }
 0x395   :  { %v509_v1 = vadd.f32 %v2365_v26, %v508_v0 }
 0x397   :  { %v539_v4 = vmax.f32 %v509_v1, 0.0 }
 0x39c   :  { %v510_v2 = vpop.f32.mrf.mxu3 }
 0x39d   :  { %v511_v3 = vadd.f32 %v2365_v26, %v510_v2 }
 0x39f   :  { %v540_v5 = vmax.f32 %v511_v3, 0.0 }
 0x3a1   :  { %v552_v6 = vpack.c.bf16 %v540_v5, %v539_v4 }
 0x3a3   :  { %580 = vmatmul.bf16.gmra.mxu0 %v552_v6 }
 0x3a4   :  { %v513_v7 = vpop.f32.mrf.mxu3 }
 0x3a5   :  { %v514_v8 = vadd.f32 %v2365_v26, %v513_v7 }
 0x3a7   :  { %v541_v11 = vmax.f32 %v514_v8, 0.0 }
 0x3ac   :  { %v515_v9 = vpop.f32.mrf.mxu3 }
 0x3ad   :  { %v516_v10 = vadd.f32 %v2365_v26, %v515_v9 }
 0x3af   :  { %v542_v12 = vmax.f32 %v516_v10, 0.0 }
 0x3b1   :  { %v553_v13 = vpack.c.bf16 %v542_v12, %v541_v11 }
 0x3b3   :  { %585 = vmatmul.bf16.gmra.mxu0 %v553_v13 }
 0x3b4   :  { %v518_v14 = vpop.f32.mrf.mxu3 }
 0x3b5   :  { %v519_v15 = vadd.f32 %v2365_v26, %v518_v14 }
 0x3b7   :  { %v543_v17 = vmax.f32 %v519_v15, 0.0 }
 0x3bc   :  { %v520_v16 = vpop.f32.mrf.mxu3 }
 0x3bd   :  { %v521_v57 = vadd.f32 %v2365_v26, %v520_v16 }
 0x3bf   :  { %v544_v18 = vmax.f32 %v521_v57, 0.0 }
 0x3c1   :  { %v554_v19 = vpack.c.bf16 %v544_v18, %v543_v17 }
 0x3c3   :  { %590 = vmatmul.bf16.gmra.mxu0 %v554_v19 }
 0x3c4   :  { %v523_v20 = vpop.f32.mrf.mxu3 }
 0x3c5   :  { %v524_v21 = vadd.f32 %v2365_v26, %v523_v20 }
 0x3c7   :  { %v545_v24 = vmax.f32 %v524_v21, 0.0 }
 0x3cc   :  { %v525_v22 = vpop.f32.mrf.mxu3 }
 0x3cd   :  { %v526_v23 = vadd.f32 %v2365_v26, %v525_v22 }
 0x3cf   :  { %v546_v25 = vmax.f32 %v526_v23, 0.0 }
 0x3d1   :  { %v555_v27 = vpack.c.bf16 %v546_v25, %v545_v24 }
 0x3d3   :  { %595 = vmatmul.bf16.gmra.mxu0 %v555_v27 }
 0x3d4   :  { %v528_v28 = vpop.f32.mrf.mxu3 }
 0x3d5   :  { %v529_v29 = vadd.f32 %v2365_v26, %v528_v28 }
 0x3d7   :  { %v547_v32 = vmax.f32 %v529_v29, 0.0 }
 0x3dc   :  { %v530_v30 = vpop.f32.mrf.mxu3 }
 0x3dd   :  { %v531_v31 = vadd.f32 %v2365_v26, %v530_v30 }
 0x3df   :  { %v548_v33 = vmax.f32 %v531_v31, 0.0 }
 0x3e1   :  { %v556_v34 = vpack.c.bf16 %v548_v33, %v547_v32 }
 0x3e3   :  { %600 = vmatmul.bf16.gmra.mxu0 %v556_v34 }
 0x3f0   :  { %v566_v35 = vpop.f32.mrf.mxu0 }
 0x3f8   :  { %v568_v36 = vpop.f32.mrf.mxu0 }
 0x3f9   :  { %v606_v11 = vpack.c.bf16 %v568_v36, %v566_v35 }
 0x400   :  { %v571_v37 = vpop.f32.mrf.mxu0 }
 0x408   :  { %v573_v38 = vpop.f32.mrf.mxu0 }
 0x409   :  { %v607_v10 = vpack.c.bf16 %v573_v38, %v571_v37 }
 0x410   :  { %v576_v39 = vpop.f32.mrf.mxu0 }
 0x418   :  { %v578_v56 = vpop.f32.mrf.mxu0 }
 0x419   :  { %v608_v9 = vpack.c.bf16 %v578_v56, %v576_v39 }
 0x420   :  { %v581_v58 = vpop.f32.mrf.mxu0 }
 0x428   :  { %v583_v59 = vpop.f32.mrf.mxu0 }
 0x429   :  { %v609_v8 = vpack.c.bf16 %v583_v59, %v581_v58 }
 0x430   :  { %v586_v60 = vpop.f32.mrf.mxu0 }
 0x438   :  { %v588_v61 = vpop.f32.mrf.mxu0 }
 0x439   :  { %v610_v7 = vpack.c.bf16 %v588_v61, %v586_v60 }
 0x440   :  { %v591_v62 = vpop.f32.mrf.mxu0 }
 0x448   :  { %v593_v63 = vpop.f32.mrf.mxu0 }
 0x449   :  { %v611_v6 = vpack.c.bf16 %v593_v63, %v591_v62 }
 0x450   :  { %v596_v0 = vpop.f32.mrf.mxu0 }
 0x458   :  { %v598_v1 = vpop.f32.mrf.mxu0 }
 0x459   :  { %v612_v5 = vpack.c.bf16 %v598_v1, %v596_v0 }
 0x460   :  { %v601_v2 = vpop.f32.mrf.mxu0 }
 0x468   :  { %v603_v3 = vpop.f32.mrf.mxu0 }
 0x469   :  { %v613_v4 = vpack.c.bf16 %v603_v3, %v601_v2 }
 0x46b   :  { %614 = vmatpush.bf16.msrb.mxu1 %v613_v4 }
 0x46f   :  { %615 = vmatpush.bf16.msrb.mxu1 %v612_v5 }
 0x473   :  { %616 = vmatpush.bf16.msrb.mxu1 %v611_v6 }
 0x477   :  { %617 = vmatpush.bf16.msrb.mxu1 %v610_v7 }
 0x47b   :  { %618 = vmatpush.bf16.msrb.mxu1 %v609_v8 }
 0x47f   :  { %619 = vmatpush.bf16.msrb.mxu1 %v608_v9 }
 0x483   :  { %620 = vmatpush.bf16.msrb.mxu1 %v607_v10 }
 0x487   :  { %621 = vmatpush.bf16.msrb.mxu1 %v606_v11 }
 0x48a   :  { %622 = vmatmul.bf16.vlgmr.msrb.gmra.mxu1 %v2208_v40 }
 0x49a   :  { %627 = vmatmul.bf16.gmra.mxu1 %v2214_v41 }
 0x4aa   :  { %632 = vmatmul.bf16.gmra.mxu1 %v2220_v42 }
 0x4ba   :  { %637 = vmatmul.bf16.gmra.mxu1 %v2226_v43 }
 0x4ca   :  { %642 = vmatmul.bf16.gmra.mxu1 %v2232_v44 }
 0x4da   :  { %647 = vmatmul.bf16.gmra.mxu1 %v2245_v46 }
 0x4ea   :  { %652 = vmatmul.bf16.gmra.mxu1 %v2277_v51 }
 0x4fa   :  { %657 = vmatmul.bf16.gmra.mxu1 %v2308_v55 }
 0x507   :  { %v623_v12 = vpop.f32.mrf.mxu1 }
 0x508   :  { %v624_v13 = vadd.f32 %v2365_v26, %v623_v12 }
 0x50a   :  { %v663_v16 = vmax.f32 %v624_v13, 0.0 }
 0x50f   :  { %v625_v14 = vpop.f32.mrf.mxu1 }
 0x510   :  { %v626_v15 = vadd.f32 %v2365_v26, %v625_v14 }
 0x512   :  { %v664_v57 = vmax.f32 %v626_v15, 0.0 }
 0x514   :  { %v679_v17 = vpack.c.bf16 %v664_v57, %v663_v16 }
 0x516   :  { %695 = vmatmul.bf16.vlgmr.msrb.gmra.mxu2 %v679_v17 }
 0x517   :  { %v628_v18 = vpop.f32.mrf.mxu1  ;;  %1207 = vmatpush.bf16.msrb.mxu2 %v2238_v45 }
 0x518   :  { %v629_v19 = vadd.f32 %v2365_v26, %v628_v18 }
 0x51a   :  { %v665_v22 = vmax.f32 %v629_v19, 0.0 }
 0x51b   :  { %1208 = vmatpush.bf16.msrb.mxu2 %v2250_v47 }
 0x51f   :  { %v630_v20 = vpop.f32.mrf.mxu1  ;;  %1209 = vmatpush.bf16.msrb.mxu2 %v2257_v48 }
 0x520   :  { %v631_v21 = vadd.f32 %v2365_v26, %v630_v20 }
 0x522   :  { %v666_v23 = vmax.f32 %v631_v21, 0.0 }
 0x523   :  { %1210 = vmatpush.bf16.msrb.mxu2 %v2264_v49 }
 0x524   :  { %v680_v24 = vpack.c.bf16 %v666_v23, %v665_v22 }
 0x526   :  { %700 = vmatmul.bf16.gmra.mxu2 %v680_v24 }
 0x527   :  { %v633_v25 = vpop.f32.mrf.mxu1  ;;  %1211 = vmatpush.bf16.msrb.mxu2 %v2272_v50 }
 0x528   :  { %v634_v27 = vadd.f32 %v2365_v26, %v633_v25 }
 0x52a   :  { %v667_v30 = vmax.f32 %v634_v27, 0.0 }
 0x52b   :  { %1212 = vmatpush.bf16.msrb.mxu2 %v2284_v52 }
 0x52f   :  { %v635_v28 = vpop.f32.mrf.mxu1  ;;  %1213 = vmatpush.bf16.msrb.mxu2 %v2292_v53 }
 0x530   :  { %v636_v29 = vadd.f32 %v2365_v26, %v635_v28 }
 0x532   :  { %v668_v31 = vmax.f32 %v636_v29, 0.0 }
 0x533   :  { %1214 = vmatpush.bf16.msrb.mxu2 %v2299_v54 }
 0x534   :  { %v681_v32 = vpack.c.bf16 %v668_v31, %v667_v30 }
 0x536   :  { %705 = vmatmul.bf16.gmra.mxu2 %v681_v32 }
 0x537   :  { %v638_v33 = vpop.f32.mrf.mxu1 }
 0x538   :  { %v639_v34 = vadd.f32 %v2365_v26, %v638_v33 }
 0x53a   :  { %v669_v37 = vmax.f32 %v639_v34, 0.0 }
 0x53f   :  { %v640_v35 = vpop.f32.mrf.mxu1 }
 0x540   :  { %v641_v36 = vadd.f32 %v2365_v26, %v640_v35 }
 0x542   :  { %v670_v38 = vmax.f32 %v641_v36, 0.0 }
 0x544   :  { %v682_v39 = vpack.c.bf16 %v670_v38, %v669_v37 }
 0x546   :  { %710 = vmatmul.bf16.gmra.mxu2 %v682_v39 }
 0x547   :  { %v643_v56 = vpop.f32.mrf.mxu1 }
 0x548   :  { %v644_v58 = vadd.f32 %v2365_v26, %v643_v56 }
 0x54a   :  { %v671_v61 = vmax.f32 %v644_v58, 0.0 }
 0x54f   :  { %v645_v59 = vpop.f32.mrf.mxu1 }
 0x550   :  { %v646_v60 = vadd.f32 %v2365_v26, %v645_v59 }
 0x552   :  { %v672_v62 = vmax.f32 %v646_v60, 0.0 }
 0x554   :  { %v683_v63 = vpack.c.bf16 %v672_v62, %v671_v61 }
 0x556   :  { %715 = vmatmul.bf16.gmra.mxu2 %v683_v63 }
 0x557   :  { %v648_v0 = vpop.f32.mrf.mxu1 }
 0x558   :  { %v649_v1 = vadd.f32 %v2365_v26, %v648_v0 }
 0x55a   :  { %v673_v4 = vmax.f32 %v649_v1, 0.0 }
 0x55f   :  { %v650_v2 = vpop.f32.mrf.mxu1 }
 0x560   :  { %v651_v3 = vadd.f32 %v2365_v26, %v650_v2 }
 0x562   :  { %v674_v5 = vmax.f32 %v651_v3, 0.0 }
 0x564   :  { %v684_v6 = vpack.c.bf16 %v674_v5, %v673_v4 }
 0x566   :  { %720 = vmatmul.bf16.gmra.mxu2 %v684_v6 }
 0x567   :  { %v653_v7 = vpop.f32.mrf.mxu1 }
 0x568   :  { %v654_v8 = vadd.f32 %v2365_v26, %v653_v7 }
 0x56a   :  { %v675_v11 = vmax.f32 %v654_v8, 0.0 }
 0x56f   :  { %v655_v9 = vpop.f32.mrf.mxu1 }
 0x570   :  { %v656_v10 = vadd.f32 %v2365_v26, %v655_v9 }
 0x572   :  { %v676_v12 = vmax.f32 %v656_v10, 0.0 }
 0x574   :  { %v685_v13 = vpack.c.bf16 %v676_v12, %v675_v11 }
 0x576   :  { %725 = vmatmul.bf16.gmra.mxu2 %v685_v13 }
 0x577   :  { %v658_v14 = vpop.f32.mrf.mxu1 }
 0x578   :  { %v659_v15 = vadd.f32 %v2365_v26, %v658_v14 }
 0x57a   :  { %v677_v17 = vmax.f32 %v659_v15, 0.0 }
 0x57f   :  { %v660_v16 = vpop.f32.mrf.mxu1 }
 0x580   :  { %v661_v57 = vadd.f32 %v2365_v26, %v660_v16 }
 0x582   :  { %v678_v18 = vmax.f32 %v661_v57, 0.0 }
 0x584   :  { %v686_v19 = vpack.c.bf16 %v678_v18, %v677_v17 }
 0x586   :  { %730 = vmatmul.bf16.gmra.mxu2 %v686_v19 }
 0x599   :  { %v696_v20 = vpop.f32.mrf.mxu2 }
 0x5a1   :  { %v698_v21 = vpop.f32.mrf.mxu2 }
 0x5a2   :  { %v736_v61 = vpack.c.bf16 %v698_v21, %v696_v20 }
 0x5a9   :  { %v701_v22 = vpop.f32.mrf.mxu2 }
 0x5b1   :  { %v703_v23 = vpop.f32.mrf.mxu2 }
 0x5b2   :  { %v737_v60 = vpack.c.bf16 %v703_v23, %v701_v22 }
 0x5b9   :  { %v706_v24 = vpop.f32.mrf.mxu2 }
 0x5c1   :  { %v708_v25 = vpop.f32.mrf.mxu2 }
 0x5c2   :  { %v738_v59 = vpack.c.bf16 %v708_v25, %v706_v24 }
 0x5c9   :  { %v711_v27 = vpop.f32.mrf.mxu2 }
 0x5d1   :  { %v713_v28 = vpop.f32.mrf.mxu2 }
 0x5d2   :  { %v739_v58 = vpack.c.bf16 %v713_v28, %v711_v27 }
 0x5d9   :  { %v716_v29 = vpop.f32.mrf.mxu2 }
 0x5e1   :  { %v718_v30 = vpop.f32.mrf.mxu2 }
 0x5e2   :  { %v740_v56 = vpack.c.bf16 %v718_v30, %v716_v29 }
 0x5e9   :  { %v721_v31 = vpop.f32.mrf.mxu2 }
 0x5f1   :  { %v723_v32 = vpop.f32.mrf.mxu2 }
 0x5f2   :  { %v741_v39 = vpack.c.bf16 %v723_v32, %v721_v31 }
 0x5f9   :  { %v726_v33 = vpop.f32.mrf.mxu2 }
 0x601   :  { %v728_v34 = vpop.f32.mrf.mxu2 }
 0x602   :  { %v742_v38 = vpack.c.bf16 %v728_v34, %v726_v33 }
 0x609   :  { %v731_v35 = vpop.f32.mrf.mxu2 }
 0x611   :  { %v733_v36 = vpop.f32.mrf.mxu2 }
 0x612   :  { %v743_v37 = vpack.c.bf16 %v733_v36, %v731_v35 }
 0x614   :  { %744 = vmatpush.bf16.msrb.mxu3 %v743_v37 }
 0x618   :  { %745 = vmatpush.bf16.msrb.mxu3 %v742_v38 }
 0x61c   :  { %746 = vmatpush.bf16.msrb.mxu3 %v741_v39 }
 0x620   :  { %747 = vmatpush.bf16.msrb.mxu3 %v740_v56 }
 0x624   :  { %748 = vmatpush.bf16.msrb.mxu3 %v739_v58 }
 0x628   :  { %749 = vmatpush.bf16.msrb.mxu3 %v738_v59 }
 0x62c   :  { %750 = vmatpush.bf16.msrb.mxu3 %v737_v60 }
 0x630   :  { %751 = vmatpush.bf16.msrb.mxu3 %v736_v61 }
 0x633   :  { %752 = vmatmul.bf16.vlgmr.msrb.gmra.mxu3 %v2208_v40 }
 0x643   :  { %757 = vmatmul.bf16.gmra.mxu3 %v2214_v41 }
 0x653   :  { %762 = vmatmul.bf16.gmra.mxu3 %v2220_v42 }
 0x663   :  { %767 = vmatmul.bf16.gmra.mxu3 %v2226_v43 }
 0x673   :  { %772 = vmatmul.bf16.gmra.mxu3 %v2232_v44 }
 0x683   :  { %777 = vmatmul.bf16.gmra.mxu3 %v2245_v46 }
 0x693   :  { %782 = vmatmul.bf16.gmra.mxu3 %v2277_v51 }
 0x6a3   :  { %787 = vmatmul.bf16.gmra.mxu3 %v2308_v55 }
 0x6b6   :  { %v753_v62 = vpop.f32.mrf.mxu3 }
 0x6b7   :  { %v754_v63 = vadd.f32 %v2365_v26, %v753_v62 }
 0x6b9   :  { %v793_v2 = vmax.f32 %v754_v63, 0.0 }
 0x6be   :  { %v755_v0 = vpop.f32.mrf.mxu3 }
 0x6bf   :  { %v756_v1 = vadd.f32 %v2365_v26, %v755_v0 }
 0x6c1   :  { %v794_v3 = vmax.f32 %v756_v1, 0.0 }
 0x6c3   :  { %v809_v4 = vpack.c.bf16 %v794_v3, %v793_v2 }
 0x6c5   :  { %825 = vmatmul.bf16.vlgmr.msra.gmra.mxu0 %v809_v4 }
 0x6c6   :  { %v758_v5 = vpop.f32.mrf.mxu3  ;;  %1337 = vmatpush.bf16.msra.mxu0 %v2238_v45 }
 0x6c7   :  { %v759_v6 = vadd.f32 %v2365_v26, %v758_v5 }
 0x6c9   :  { %v795_v9 = vmax.f32 %v759_v6, 0.0 }
 0x6ca   :  { %1338 = vmatpush.bf16.msra.mxu0 %v2250_v47 }
 0x6ce   :  { %v760_v7 = vpop.f32.mrf.mxu3  ;;  %1339 = vmatpush.bf16.msra.mxu0 %v2257_v48 }
 0x6cf   :  { %v761_v8 = vadd.f32 %v2365_v26, %v760_v7 }
 0x6d1   :  { %v796_v10 = vmax.f32 %v761_v8, 0.0 }
 0x6d2   :  { %1340 = vmatpush.bf16.msra.mxu0 %v2264_v49 }
 0x6d3   :  { %v810_v11 = vpack.c.bf16 %v796_v10, %v795_v9 }
 0x6d5   :  { %830 = vmatmul.bf16.gmra.mxu0 %v810_v11 }
 0x6d6   :  { %v763_v12 = vpop.f32.mrf.mxu3  ;;  %1341 = vmatpush.bf16.msra.mxu0 %v2272_v50 }
 0x6d7   :  { %v764_v45 = vadd.f32 %v2365_v26, %v763_v12 }
 0x6d9   :  { %v797_v13 = vmax.f32 %v764_v45, 0.0 }
 0x6da   :  { %1342 = vmatpush.bf16.msra.mxu0 %v2284_v52 }
 0x6de   :  { %v765_v47 = vpop.f32.mrf.mxu3  ;;  %1343 = vmatpush.bf16.msra.mxu0 %v2292_v53 }
 0x6df   :  { %v766_v48 = vadd.f32 %v2365_v26, %v765_v47 }
 0x6e1   :  { %v798_v14 = vmax.f32 %v766_v48, 0.0 }
 0x6e2   :  { %1344 = vmatpush.bf16.msra.mxu0 %v2299_v54 }
 0x6e3   :  { %v811_v15 = vpack.c.bf16 %v798_v14, %v797_v13 }
 0x6e5   :  { %835 = vmatmul.bf16.gmra.mxu0 %v811_v15 }
 0x6e6   :  { %v768_v49 = vpop.f32.mrf.mxu3 }
 0x6e7   :  { %v769_v16 = vadd.f32 %v2365_v26, %v768_v49 }
 0x6e9   :  { %v799_v52 = vmax.f32 %v769_v16, 0.0 }
 0x6ee   :  { %v770_v57 = vpop.f32.mrf.mxu3 }
 0x6ef   :  { %v771_v50 = vadd.f32 %v2365_v26, %v770_v57 }
 0x6f1   :  { %v800_v17 = vmax.f32 %v771_v50, 0.0 }
 0x6f3   :  { %v812_v18 = vpack.c.bf16 %v800_v17, %v799_v52 }
 0x6f5   :  { %840 = vmatmul.bf16.gmra.mxu0 %v812_v18 }
 0x6f6   :  { %v773_v19 = vpop.f32.mrf.mxu3 }
 0x6f7   :  { %v774_v53 = vadd.f32 %v2365_v26, %v773_v19 }
 0x6f9   :  { %v801_v22 = vmax.f32 %v774_v53, 0.0 }
 0x6fe   :  { %v775_v20 = vpop.f32.mrf.mxu3 }
 0x6ff   :  { %v776_v21 = vadd.f32 %v2365_v26, %v775_v20 }
 0x701   :  { %v802_v54 = vmax.f32 %v776_v21, 0.0 }
 0x703   :  { %v813_v23 = vpack.c.bf16 %v802_v54, %v801_v22 }
 0x705   :  { %845 = vmatmul.bf16.gmra.mxu0 %v813_v23 }
 0x706   :  { %v778_v24 = vpop.f32.mrf.mxu3 }
 0x707   :  { %v779_v25 = vadd.f32 %v2365_v26, %v778_v24 }
 0x709   :  { %v803_v29 = vmax.f32 %v779_v25, 0.0 }
 0x70e   :  { %v780_v27 = vpop.f32.mrf.mxu3 }
 0x70f   :  { %v781_v28 = vadd.f32 %v2365_v26, %v780_v27 }
 0x711   :  { %v804_v30 = vmax.f32 %v781_v28, 0.0 }
 0x713   :  { %v814_v31 = vpack.c.bf16 %v804_v30, %v803_v29 }
 0x715   :  { %850 = vmatmul.bf16.gmra.mxu0 %v814_v31 }
 0x716   :  { %v783_v32 = vpop.f32.mrf.mxu3 }
 0x717   :  { %v784_v33 = vadd.f32 %v2365_v26, %v783_v32 }
 0x719   :  { %v805_v36 = vmax.f32 %v784_v33, 0.0 }
 0x71e   :  { %v785_v34 = vpop.f32.mrf.mxu3 }
 0x71f   :  { %v786_v35 = vadd.f32 %v2365_v26, %v785_v34 }
 0x721   :  { %v806_v37 = vmax.f32 %v786_v35, 0.0 }
 0x723   :  { %v815_v38 = vpack.c.bf16 %v806_v37, %v805_v36 }
 0x725   :  { %855 = vmatmul.bf16.gmra.mxu0 %v815_v38 }
 0x726   :  { %v788_v39 = vpop.f32.mrf.mxu3 }
 0x727   :  { %v789_v56 = vadd.f32 %v2365_v26, %v788_v39 }
 0x729   :  { %v807_v60 = vmax.f32 %v789_v56, 0.0 }
 0x72e   :  { %v790_v58 = vpop.f32.mrf.mxu3 }
 0x72f   :  { %v791_v59 = vadd.f32 %v2365_v26, %v790_v58 }
 0x731   :  { %v808_v61 = vmax.f32 %v791_v59, 0.0 }
 0x733   :  { %v816_v62 = vpack.c.bf16 %v808_v61, %v807_v60 }
 0x735   :  { %860 = vmatmul.bf16.gmra.mxu0 %v816_v62 }
 0x742   :  { %v826_v63 = vpop.f32.mrf.mxu0 }
 0x74a   :  { %v828_v0 = vpop.f32.mrf.mxu0 }
 0x74b   :  { %v866_v50 = vpack.c.bf16 %v828_v0, %v826_v63 }
 0x752   :  { %v831_v1 = vpop.f32.mrf.mxu0 }
 0x75a   :  { %v833_v2 = vpop.f32.mrf.mxu0 }
 0x75b   :  { %v867_v57 = vpack.c.bf16 %v833_v2, %v831_v1 }
 0x762   :  { %v836_v3 = vpop.f32.mrf.mxu0 }
 0x76a   :  { %v838_v4 = vpop.f32.mrf.mxu0 }
 0x76b   :  { %v868_v16 = vpack.c.bf16 %v838_v4, %v836_v3 }
 0x772   :  { %v841_v5 = vpop.f32.mrf.mxu0 }
 0x77a   :  { %v843_v6 = vpop.f32.mrf.mxu0 }
 0x77b   :  { %v869_v49 = vpack.c.bf16 %v843_v6, %v841_v5 }
 0x782   :  { %v846_v7 = vpop.f32.mrf.mxu0 }
 0x78a   :  { %v848_v8 = vpop.f32.mrf.mxu0 }
 0x78b   :  { %v870_v15 = vpack.c.bf16 %v848_v8, %v846_v7 }
 0x792   :  { %v851_v9 = vpop.f32.mrf.mxu0 }
 0x79a   :  { %v853_v10 = vpop.f32.mrf.mxu0 }
 0x79b   :  { %v871_v14 = vpack.c.bf16 %v853_v10, %v851_v9 }
 0x7a2   :  { %v856_v11 = vpop.f32.mrf.mxu0 }
 0x7aa   :  { %v858_v12 = vpop.f32.mrf.mxu0 }
 0x7ab   :  { %v872_v13 = vpack.c.bf16 %v858_v12, %v856_v11 }
 0x7b2   :  { %v861_v45 = vpop.f32.mrf.mxu0 }
 0x7ba   :  { %v863_v47 = vpop.f32.mrf.mxu0 }
 0x7bb   :  { %v873_v48 = vpack.c.bf16 %v863_v47, %v861_v45 }
 0x7bd   :  { %874 = vmatpush.bf16.msra.mxu1 %v873_v48 }
 0x7c1   :  { %875 = vmatpush.bf16.msra.mxu1 %v872_v13 }
 0x7c5   :  { %876 = vmatpush.bf16.msra.mxu1 %v871_v14 }
 0x7c9   :  { %877 = vmatpush.bf16.msra.mxu1 %v870_v15 }
 0x7cd   :  { %878 = vmatpush.bf16.msra.mxu1 %v869_v49 }
 0x7d1   :  { %879 = vmatpush.bf16.msra.mxu1 %v868_v16 }
 0x7d5   :  { %880 = vmatpush.bf16.msra.mxu1 %v867_v57 }
 0x7d9   :  { %881 = vmatpush.bf16.msra.mxu1 %v866_v50 }
 0x7dc   :  { %882 = vmatmul.bf16.vlgmr.msra.gmra.mxu1 %v2208_v40 }
 0x7ec   :  { %887 = vmatmul.bf16.gmra.mxu1 %v2214_v41 }
 0x7fc   :  { %892 = vmatmul.bf16.gmra.mxu1 %v2220_v42 }
 0x80c   :  { %897 = vmatmul.bf16.gmra.mxu1 %v2226_v43 }
 0x81c   :  { %902 = vmatmul.bf16.gmra.mxu1 %v2232_v44 }
 0x82c   :  { %907 = vmatmul.bf16.gmra.mxu1 %v2245_v46 }
 0x83c   :  { %912 = vmatmul.bf16.gmra.mxu1 %v2277_v51 }
 0x84c   :  { %917 = vmatmul.bf16.gmra.mxu1 %v2308_v55 }
 0x859   :  { %v883_v52 = vpop.f32.mrf.mxu1 }
 0x85a   :  { %v884_v17 = vadd.f32 %v2365_v26, %v883_v52 }
 0x85c   :  { %v923_v19 = vmax.f32 %v884_v17, 0.0 }
 0x861   :  { %v885_v18 = vpop.f32.mrf.mxu1 }
 0x862   :  { %v886_v40 = vadd.f32 %v2365_v26, %v885_v18 }
 0x864   :  { %v924_v41 = vmax.f32 %v886_v40, 0.0 }
 0x866   :  { %v939_v53 = vpack.c.bf16 %v924_v41, %v923_v19 }
 0x868   :  { %955 = vmatmul.bf16.vlgmr.msra.gmra.mxu2 %v939_v53 }
 0x869   :  { %v888_v42 = vpop.f32.mrf.mxu1 }
 0x86a   :  { %v889_v43 = vadd.f32 %v2365_v26, %v888_v42 }
 0x86c   :  { %v925_v20 = vmax.f32 %v889_v43, 0.0 }
 0x871   :  { %v890_v44 = vpop.f32.mrf.mxu1 }
 0x872   :  { %v891_v46 = vadd.f32 %v2365_v26, %v890_v44 }
 0x874   :  { %v926_v51 = vmax.f32 %v891_v46, 0.0 }
 0x876   :  { %v940_v21 = vpack.c.bf16 %v926_v51, %v925_v20 }
 0x878   :  { %960 = vmatmul.bf16.gmra.mxu2 %v940_v21 }
 0x879   :  { %v893_v55 = vpop.f32.mrf.mxu1 }
 0x87a   :  { %v894_v22 = vadd.f32 %v2365_v26, %v893_v55 }
 0x87c   :  { %v927_v24 = vmax.f32 %v894_v22, 0.0 }
 0x881   :  { %v895_v54 = vpop.f32.mrf.mxu1 }
 0x882   :  { %v896_v23 = vadd.f32 %v2365_v26, %v895_v54 }
 0x884   :  { %v928_v25 = vmax.f32 %v896_v23, 0.0  ;;  %v2482_v23 = vld [vmem:[%s2883_s1] sm:$0xff] }
 0x886   :  { %v941_v27 = vpack.c.bf16 %v928_v25, %v927_v24  ;;  %v2488_v24 = vld [vmem:[%s2883_s1 + $0x8] sm:$0xff]  ;;  %v2494_v25 = vld [vmem:[%s2883_s1 + $0x10] sm:$0xff] }
 0x888   :  { %965 = vmatmul.bf16.gmra.mxu2 %v941_v27  ;;  %v2500_v27 = vld [vmem:[%s2883_s1 + $0x18] sm:$0xff] }
 0x889   :  { %v898_v28 = vpop.f32.mrf.mxu1 }
 0x88a   :  { %v899_v29 = vadd.f32 %v2365_v26, %v898_v28  ;;  %v2506_v28 = vld [vmem:[%s2883_s1 + $0x20] sm:$0xff] }
 0x88c   :  { %v929_v32 = vmax.f32 %v899_v29, 0.0  ;;  %v2512_v29 = vld [vmem:[%s2883_s1 + $0x28] sm:$0xff] }
 0x891   :  { %v900_v30 = vpop.f32.mrf.mxu1 }
 0x892   :  { %v901_v31 = vadd.f32 %v2365_v26, %v900_v30  ;;  %v2518_v30 = vld [vmem:[%s2883_s1 + $0x30] sm:$0xff] }
 0x894   :  { %v930_v33 = vmax.f32 %v901_v31, 0.0  ;;  %v2524_v31 = vld [vmem:[%s2883_s1 + $0x38] sm:$0xff] }
 0x896   :  { %v942_v34 = vpack.c.bf16 %v930_v33, %v929_v32 }
 0x898   :  { %970 = vmatmul.bf16.gmra.mxu2 %v942_v34 }
 0x899   :  { %v903_v35 = vpop.f32.mrf.mxu1 }
 0x89a   :  { %v904_v36 = vadd.f32 %v2365_v26, %v903_v35 }
 0x89c   :  { %v931_v39 = vmax.f32 %v904_v36, 0.0 }
 0x8a1   :  { %v905_v37 = vpop.f32.mrf.mxu1 }
 0x8a2   :  { %v906_v38 = vadd.f32 %v2365_v26, %v905_v37 }
 0x8a4   :  { %v932_v56 = vmax.f32 %v906_v38, 0.0 }
 0x8a6   :  { %v943_v58 = vpack.c.bf16 %v932_v56, %v931_v39 }
 0x8a8   :  { %975 = vmatmul.bf16.gmra.mxu2 %v943_v58 }
 0x8a9   :  { %v908_v59 = vpop.f32.mrf.mxu1 }
 0x8aa   :  { %v909_v60 = vadd.f32 %v2365_v26, %v908_v59 }
 0x8ac   :  { %v933_v63 = vmax.f32 %v909_v60, 0.0 }
 0x8b1   :  { %v910_v61 = vpop.f32.mrf.mxu1 }
 0x8b2   :  { %v911_v62 = vadd.f32 %v2365_v26, %v910_v61 }
 0x8b4   :  { %v934_v0 = vmax.f32 %v911_v62, 0.0 }
 0x8b6   :  { %v944_v1 = vpack.c.bf16 %v934_v0, %v933_v63 }
 0x8b8   :  { %980 = vmatmul.bf16.gmra.mxu2 %v944_v1 }
 0x8b9   :  { %v913_v2 = vpop.f32.mrf.mxu1 }
 0x8ba   :  { %v914_v3 = vadd.f32 %v2365_v26, %v913_v2 }
 0x8bc   :  { %v935_v6 = vmax.f32 %v914_v3, 0.0 }
 0x8c1   :  { %v915_v4 = vpop.f32.mrf.mxu1 }
 0x8c2   :  { %v916_v5 = vadd.f32 %v2365_v26, %v915_v4 }
 0x8c4   :  { %v936_v7 = vmax.f32 %v916_v5, 0.0 }
 0x8c6   :  { %v945_v8 = vpack.c.bf16 %v936_v7, %v935_v6 }
 0x8c8   :  { %985 = vmatmul.bf16.gmra.mxu2 %v945_v8 }
 0x8c9   :  { %v918_v9 = vpop.f32.mrf.mxu1 }
 0x8ca   :  { %v919_v10 = vadd.f32 %v2365_v26, %v918_v9 }
 0x8cc   :  { %v937_v45 = vmax.f32 %v919_v10, 0.0 }
 0x8d1   :  { %v920_v11 = vpop.f32.mrf.mxu1 }
 0x8d2   :  { %v921_v12 = vadd.f32 %v2365_v26, %v920_v11 }
 0x8d4   :  { %v938_v47 = vmax.f32 %v921_v12, 0.0 }
 0x8d6   :  { %v946_v48 = vpack.c.bf16 %v938_v47, %v937_v45 }
 0x8d8   :  { %990 = vmatmul.bf16.gmra.mxu2 %v946_v48 }
 0x8eb   :  { %v956_v13 = vpop.f32.mrf.mxu2 }
 0x8f3   :  { %v958_v14 = vpop.f32.mrf.mxu2 }
 0x8f4   :  { %v996_v54 = vpack.c.bf16 %v958_v14, %v956_v13 }
 0x8fb   :  { %v961_v15 = vpop.f32.mrf.mxu2 }
 0x903   :  { %v963_v49 = vpop.f32.mrf.mxu2 }
 0x904   :  { %v997_v22 = vpack.c.bf16 %v963_v49, %v961_v15 }
 0x90b   :  { %v966_v16 = vpop.f32.mrf.mxu2 }
 0x913   :  { %v968_v57 = vpop.f32.mrf.mxu2 }
 0x914   :  { %v998_v55 = vpack.c.bf16 %v968_v57, %v966_v16 }
 0x91b   :  { %v971_v50 = vpop.f32.mrf.mxu2 }
 0x923   :  { %v973_v52 = vpop.f32.mrf.mxu2 }
 0x924   :  { %v999_v21 = vpack.c.bf16 %v973_v52, %v971_v50 }
 0x92b   :  { %v976_v17 = vpop.f32.mrf.mxu2 }
 0x933   :  { %v978_v18 = vpop.f32.mrf.mxu2 }
 0x934   :  { %v1000_v51 = vpack.c.bf16 %v978_v18, %v976_v17 }
 0x93b   :  { %v981_v40 = vpop.f32.mrf.mxu2 }
 0x943   :  { %v983_v19 = vpop.f32.mrf.mxu2 }
 0x944   :  { %v1001_v20 = vpack.c.bf16 %v983_v19, %v981_v40 }
 0x94b   :  { %v986_v41 = vpop.f32.mrf.mxu2 }
 0x953   :  { %v988_v53 = vpop.f32.mrf.mxu2 }
 0x954   :  { %v1002_v46 = vpack.c.bf16 %v988_v53, %v986_v41 }
 0x95b   :  { %v991_v42 = vpop.f32.mrf.mxu2 }
 0x963   :  { %v993_v43 = vpop.f32.mrf.mxu2 }
 0x964   :  { %v1003_v44 = vpack.c.bf16 %v993_v43, %v991_v42 }
 0x966   :  { %1004 = vmatpush.bf16.msra.mxu3 %v1003_v44 }
 0x96a   :  { %1005 = vmatpush.bf16.msra.mxu3 %v1002_v46 }
 0x96e   :  { %1006 = vmatpush.bf16.msra.mxu3 %v1001_v20 }
 0x972   :  { %1007 = vmatpush.bf16.msra.mxu3 %v1000_v51 }
 0x976   :  { %1008 = vmatpush.bf16.msra.mxu3 %v999_v21 }
 0x97a   :  { %1009 = vmatpush.bf16.msra.mxu3 %v998_v55 }
 0x97e   :  { %1010 = vmatpush.bf16.msra.mxu3 %v997_v22 }
 0x982   :  { %1011 = vmatpush.bf16.msra.mxu3 %v996_v54 }
 0x985   :  { %1012 = vmatmul.bf16.vlgmr.msra.gmra.mxu3 %v2482_v23 }
 0x995   :  { %1017 = vmatmul.bf16.gmra.mxu3 %v2488_v24 }
 0x9a5   :  { %1022 = vmatmul.bf16.gmra.mxu3 %v2494_v25 }
 0x9b5   :  { %1027 = vmatmul.bf16.gmra.mxu3 %v2500_v27 }
 0x9c5   :  { %1032 = vmatmul.bf16.gmra.mxu3 %v2506_v28 }
 0x9d5   :  { %1037 = vmatmul.bf16.gmra.mxu3 %v2512_v29 }
 0x9e5   :  { %1042 = vmatmul.bf16.gmra.mxu3 %v2518_v30 }
 0x9f5   :  { %1047 = vmatmul.bf16.gmra.mxu3 %v2524_v31 }
 0xa08   :  { %v1013_v32 = vpop.f32.mrf.mxu3 }
 0xa09   :  { %v1014_v33 = vadd.f32 %v2365_v26, %v1013_v32 }
 0xa0b   :  { %v1053_v36 = vmax.f32 %v1014_v33, 0.0 }
 0xa10   :  { %v1015_v34 = vpop.f32.mrf.mxu3 }
 0xa11   :  { %v1016_v35 = vadd.f32 %v2365_v26, %v1015_v34 }
 0xa13   :  { %v1054_v37 = vmax.f32 %v1016_v35, 0.0 }
 0xa15   :  { %v1069_v38 = vpack.c.bf16 %v1054_v37, %v1053_v36 }
 0xa17   :  { %1085 = vmatmul.bf16.vlgmr.msrb.gmra.mxu0 %v1069_v38 }
 0xa18   :  { %v1018_v39 = vpop.f32.mrf.mxu3 }
 0xa19   :  { %v1019_v56 = vadd.f32 %v2365_v26, %v1018_v39 }
 0xa1b   :  { %v1055_v60 = vmax.f32 %v1019_v56, 0.0 }
 0xa20   :  { %v1020_v58 = vpop.f32.mrf.mxu3 }
 0xa21   :  { %v1021_v59 = vadd.f32 %v2365_v26, %v1020_v58 }
 0xa23   :  { %v1056_v61 = vmax.f32 %v1021_v59, 0.0 }
 0xa25   :  { %v1070_v62 = vpack.c.bf16 %v1056_v61, %v1055_v60 }
 0xa27   :  { %1090 = vmatmul.bf16.gmra.mxu0 %v1070_v62 }
 0xa28   :  { %v1023_v63 = vpop.f32.mrf.mxu3 }
 0xa29   :  { %v1024_v0 = vadd.f32 %v2365_v26, %v1023_v63 }
 0xa2b   :  { %v1057_v3 = vmax.f32 %v1024_v0, 0.0 }
 0xa30   :  { %v1025_v1 = vpop.f32.mrf.mxu3 }
 0xa31   :  { %v1026_v2 = vadd.f32 %v2365_v26, %v1025_v1 }
 0xa33   :  { %v1058_v4 = vmax.f32 %v1026_v2, 0.0 }
 0xa35   :  { %v1071_v5 = vpack.c.bf16 %v1058_v4, %v1057_v3 }
 0xa37   :  { %1095 = vmatmul.bf16.gmra.mxu0 %v1071_v5 }
 0xa38   :  { %v1028_v6 = vpop.f32.mrf.mxu3 }
 0xa39   :  { %v1029_v7 = vadd.f32 %v2365_v26, %v1028_v6 }
 0xa3b   :  { %v1059_v10 = vmax.f32 %v1029_v7, 0.0 }
 0xa40   :  { %v1030_v8 = vpop.f32.mrf.mxu3 }
 0xa41   :  { %v1031_v9 = vadd.f32 %v2365_v26, %v1030_v8 }
 0xa43   :  { %v1060_v11 = vmax.f32 %v1031_v9, 0.0 }
 0xa45   :  { %v1072_v12 = vpack.c.bf16 %v1060_v11, %v1059_v10  ;;  %v2554_v10 = vld [vmem:[%s2885_s5] ss:$0 sm:$0xff] }
 0xa47   :  { %1100 = vmatmul.bf16.gmra.mxu0 %v1072_v12 }
 0xa48   :  { %v1033_v45 = vpop.f32.mrf.mxu3 }
 0xa49   :  { %v1034_v47 = vadd.f32 %v2365_v26, %v1033_v45 }
 0xa4b   :  { %v1061_v14 = vmax.f32 %v1034_v47, 0.0 }
 0xa50   :  { %v1035_v48 = vpop.f32.mrf.mxu3 }
 0xa51   :  { %v1036_v13 = vadd.f32 %v2365_v26, %v1035_v48 }
 0xa53   :  { %v1062_v15 = vmax.f32 %v1036_v13, 0.0 }
 0xa55   :  { %v1073_v49 = vpack.c.bf16 %v1062_v15, %v1061_v14 }
 0xa57   :  { %1105 = vmatmul.bf16.gmra.mxu0 %v1073_v49 }
 0xa58   :  { %v1038_v16 = vpop.f32.mrf.mxu3 }
 0xa59   :  { %v1039_v57 = vadd.f32 %v2365_v26, %v1038_v16 }
 0xa5b   :  { %v1063_v17 = vmax.f32 %v1039_v57, 0.0 }
 0xa60   :  { %v1040_v50 = vpop.f32.mrf.mxu3 }
 0xa61   :  { %v1041_v52 = vadd.f32 %v2365_v26, %v1040_v50 }
 0xa63   :  { %v1064_v18 = vmax.f32 %v1041_v52, 0.0 }
 0xa65   :  { %v1074_v40 = vpack.c.bf16 %v1064_v18, %v1063_v17 }
 0xa67   :  { %1110 = vmatmul.bf16.gmra.mxu0 %v1074_v40 }
 0xa68   :  { %v1043_v19 = vpop.f32.mrf.mxu3 }
 0xa69   :  { %v1044_v41 = vadd.f32 %v2365_v26, %v1043_v19 }
 0xa6b   :  { %v1065_v43 = vmax.f32 %v1044_v41, 0.0 }
 0xa70   :  { %v1045_v53 = vpop.f32.mrf.mxu3 }
 0xa71   :  { %v1046_v42 = vadd.f32 %v2365_v26, %v1045_v53 }
 0xa73   :  { %v1066_v44 = vmax.f32 %v1046_v42, 0.0 }
 0xa75   :  { %v1075_v46 = vpack.c.bf16 %v1066_v44, %v1065_v43 }
 0xa77   :  { %1115 = vmatmul.bf16.gmra.mxu0 %v1075_v46 }
 0xa78   :  { %v1048_v20 = vpop.f32.mrf.mxu3 }
 0xa79   :  { %v1049_v51 = vadd.f32 %v2365_v26, %v1048_v20 }
 0xa7b   :  { %v1067_v22 = vmax.f32 %v1049_v51, 0.0 }
 0xa80   :  { %v1050_v21 = vpop.f32.mrf.mxu3 }
 0xa81   :  { %v1051_v55 = vadd.f32 %v2365_v26, %v1050_v21 }
 0xa83   :  { %v1068_v54 = vmax.f32 %v1051_v55, 0.0 }
 0xa85   :  { %v1076_v32 = vpack.c.bf16 %v1068_v54, %v1067_v22 }
 0xa87   :  { %1120 = vmatmul.bf16.gmra.mxu0 %v1076_v32 }
 0xa94   :  { %v1086_v33 = vpop.f32.mrf.mxu0 }
 0xa9c   :  { %v1088_v34 = vpop.f32.mrf.mxu0 }
 0xa9d   :  { %v1126_v8 = vpack.c.bf16 %v1088_v34, %v1086_v33 }
 0xaa4   :  { %v1091_v35 = vpop.f32.mrf.mxu0 }
 0xaac   :  { %v1093_v36 = vpop.f32.mrf.mxu0 }
 0xaad   :  { %v1127_v7 = vpack.c.bf16 %v1093_v36, %v1091_v35 }
 0xab4   :  { %v1096_v37 = vpop.f32.mrf.mxu0 }
 0xabc   :  { %v1098_v38 = vpop.f32.mrf.mxu0 }
 0xabd   :  { %v1128_v6 = vpack.c.bf16 %v1098_v38, %v1096_v37 }
 0xac4   :  { %v1101_v39 = vpop.f32.mrf.mxu0 }
 0xacc   :  { %v1103_v56 = vpop.f32.mrf.mxu0 }
 0xacd   :  { %v1129_v5 = vpack.c.bf16 %v1103_v56, %v1101_v39 }
 0xad4   :  { %v1106_v58 = vpop.f32.mrf.mxu0 }
 0xadc   :  { %v1108_v59 = vpop.f32.mrf.mxu0 }
 0xadd   :  { %v1130_v4 = vpack.c.bf16 %v1108_v59, %v1106_v58 }
 0xae4   :  { %v1111_v60 = vpop.f32.mrf.mxu0 }
 0xaec   :  { %v1113_v61 = vpop.f32.mrf.mxu0 }
 0xaed   :  { %v1131_v3 = vpack.c.bf16 %v1113_v61, %v1111_v60 }
 0xaf4   :  { %v1116_v62 = vpop.f32.mrf.mxu0 }
 0xafc   :  { %v1118_v63 = vpop.f32.mrf.mxu0 }
 0xafd   :  { %v1132_v2 = vpack.c.bf16 %v1118_v63, %v1116_v62 }
 0xb04   :  { %v1121_v0 = vpop.f32.mrf.mxu0 }
 0xb0c   :  { %v1123_v26 = vpop.f32.mrf.mxu0 }
 0xb0d   :  { %v1133_v1 = vpack.c.bf16 %v1123_v26, %v1121_v0 }
 0xb0f   :  { %1134 = vmatpush.bf16.msrb.mxu1 %v1133_v1 }
 0xb13   :  { %1135 = vmatpush.bf16.msrb.mxu1 %v1132_v2 }
 0xb17   :  { %1136 = vmatpush.bf16.msrb.mxu1 %v1131_v3 }
 0xb1b   :  { %1137 = vmatpush.bf16.msrb.mxu1 %v1130_v4 }
 0xb1f   :  { %1138 = vmatpush.bf16.msrb.mxu1 %v1129_v5 }
 0xb23   :  { %1139 = vmatpush.bf16.msrb.mxu1 %v1128_v6 }
 0xb27   :  { %1140 = vmatpush.bf16.msrb.mxu1 %v1127_v7 }
 0xb2b   :  { %1141 = vmatpush.bf16.msrb.mxu1 %v1126_v8 }
 0xb2e   :  { %1142 = vmatmul.bf16.vlgmr.msrb.gmra.mxu1 %v2482_v23 }
 0xb3e   :  { %1147 = vmatmul.bf16.gmra.mxu1 %v2488_v24 }
 0xb4e   :  { %1152 = vmatmul.bf16.gmra.mxu1 %v2494_v25 }
 0xb5e   :  { %1157 = vmatmul.bf16.gmra.mxu1 %v2500_v27 }
 0xb6e   :  { %1162 = vmatmul.bf16.gmra.mxu1 %v2506_v28 }
 0xb7e   :  { %1167 = vmatmul.bf16.gmra.mxu1 %v2512_v29 }
 0xb8e   :  { %1172 = vmatmul.bf16.gmra.mxu1 %v2518_v30 }
 0xb9e   :  { %1177 = vmatmul.bf16.gmra.mxu1 %v2524_v31 }
 0xbab   :  { %v1143_v9 = vpop.f32.mrf.mxu1 }
 0xbac   :  { %v1144_v11 = vadd.f32 %v2554_v10, %v1143_v9 }
 0xbae   :  { %v1183_v47 = vmax.f32 %v1144_v11, 0.0 }
 0xbb3   :  { %v1145_v12 = vpop.f32.mrf.mxu1 }
 0xbb4   :  { %v1146_v45 = vadd.f32 %v2554_v10, %v1145_v12 }
 0xbb6   :  { %v1184_v48 = vmax.f32 %v1146_v45, 0.0 }
 0xbb8   :  { %v1199_v13 = vpack.c.bf16 %v1184_v48, %v1183_v47 }
 0xbba   :  { %1215 = vmatmul.bf16.vlgmr.msrb.gmra.mxu2 %v1199_v13 }
 0xbbb   :  { %v1148_v14 = vpop.f32.mrf.mxu1 }
 0xbbc   :  { %v1149_v15 = vadd.f32 %v2554_v10, %v1148_v14 }
 0xbbe   :  { %v1185_v57 = vmax.f32 %v1149_v15, 0.0 }
 0xbc3   :  { %v1150_v49 = vpop.f32.mrf.mxu1 }
 0xbc4   :  { %v1151_v16 = vadd.f32 %v2554_v10, %v1150_v49 }
 0xbc6   :  { %v1186_v50 = vmax.f32 %v1151_v16, 0.0 }
 0xbc8   :  { %v1200_v52 = vpack.c.bf16 %v1186_v50, %v1185_v57 }
 0xbca   :  { %1220 = vmatmul.bf16.gmra.mxu2 %v1200_v52 }
 0xbcb   :  { %v1153_v17 = vpop.f32.mrf.mxu1 }
 0xbcc   :  { %v1154_v18 = vadd.f32 %v2554_v10, %v1153_v17 }
 0xbce   :  { %v1187_v41 = vmax.f32 %v1154_v18, 0.0 }
 0xbd3   :  { %v1155_v40 = vpop.f32.mrf.mxu1 }
 0xbd4   :  { %v1156_v19 = vadd.f32 %v2554_v10, %v1155_v40 }
 0xbd6   :  { %v1188_v53 = vmax.f32 %v1156_v19, 0.0 }
 0xbd8   :  { %v1201_v42 = vpack.c.bf16 %v1188_v53, %v1187_v41 }
 0xbda   :  { %1225 = vmatmul.bf16.gmra.mxu2 %v1201_v42 }
 0xbdb   :  { %v1158_v43 = vpop.f32.mrf.mxu1 }
 0xbdc   :  { %v1159_v44 = vadd.f32 %v2554_v10, %v1158_v43 }
 0xbde   :  { %v1189_v51 = vmax.f32 %v1159_v44, 0.0 }
 0xbe3   :  { %v1160_v46 = vpop.f32.mrf.mxu1 }
 0xbe4   :  { %v1161_v20 = vadd.f32 %v2554_v10, %v1160_v46 }
 0xbe6   :  { %v1190_v21 = vmax.f32 %v1161_v20, 0.0 }
 0xbe8   :  { %v1202_v55 = vpack.c.bf16 %v1190_v21, %v1189_v51 }
 0xbea   :  { %1230 = vmatmul.bf16.gmra.mxu2 %v1202_v55 }
 0xbeb   :  { %v1163_v22 = vpop.f32.mrf.mxu1 }
 0xbec   :  { %v1164_v54 = vadd.f32 %v2554_v10, %v1163_v22 }
 0xbee   :  { %v1191_v34 = vmax.f32 %v1164_v54, 0.0 }
 0xbf3   :  { %v1165_v32 = vpop.f32.mrf.mxu1 }
 0xbf4   :  { %v1166_v33 = vadd.f32 %v2554_v10, %v1165_v32 }
 0xbf6   :  { %v1192_v35 = vmax.f32 %v1166_v33, 0.0 }
 0xbf8   :  { %v1203_v36 = vpack.c.bf16 %v1192_v35, %v1191_v34 }
 0xbfa   :  { %1235 = vmatmul.bf16.gmra.mxu2 %v1203_v36 }
 0xbfb   :  { %v1168_v37 = vpop.f32.mrf.mxu1 }
 0xbfc   :  { %v1169_v38 = vadd.f32 %v2554_v10, %v1168_v37 }
 0xbfe   :  { %v1193_v58 = vmax.f32 %v1169_v38, 0.0 }
 0xc03   :  { %v1170_v39 = vpop.f32.mrf.mxu1 }
 0xc04   :  { %v1171_v56 = vadd.f32 %v2554_v10, %v1170_v39 }
 0xc06   :  { %v1194_v59 = vmax.f32 %v1171_v56, 0.0 }
 0xc08   :  { %v1204_v60 = vpack.c.bf16 %v1194_v59, %v1193_v58 }
 0xc0a   :  { %1240 = vmatmul.bf16.gmra.mxu2 %v1204_v60 }
 0xc0b   :  { %v1173_v61 = vpop.f32.mrf.mxu1 }
 0xc0c   :  { %v1174_v62 = vadd.f32 %v2554_v10, %v1173_v61 }
 0xc0e   :  { %v1195_v26 = vmax.f32 %v1174_v62, 0.0 }
 0xc13   :  { %v1175_v63 = vpop.f32.mrf.mxu1 }
 0xc14   :  { %v1176_v0 = vadd.f32 %v2554_v10, %v1175_v63 }
 0xc16   :  { %v1196_v1 = vmax.f32 %v1176_v0, 0.0 }
 0xc18   :  { %v1205_v2 = vpack.c.bf16 %v1196_v1, %v1195_v26 }
 0xc1a   :  { %1245 = vmatmul.bf16.gmra.mxu2 %v1205_v2 }
 0xc1b   :  { %v1178_v3 = vpop.f32.mrf.mxu1 }
 0xc1c   :  { %v1179_v4 = vadd.f32 %v2554_v10, %v1178_v3 }
 0xc1e   :  { %v1197_v7 = vmax.f32 %v1179_v4, 0.0 }
 0xc23   :  { %v1180_v5 = vpop.f32.mrf.mxu1 }
 0xc24   :  { %v1181_v6 = vadd.f32 %v2554_v10, %v1180_v5 }
 0xc26   :  { %v1198_v8 = vmax.f32 %v1181_v6, 0.0 }
 0xc28   :  { %v1206_v9 = vpack.c.bf16 %v1198_v8, %v1197_v7 }
 0xc2a   :  { %1250 = vmatmul.bf16.gmra.mxu2 %v1206_v9 }
 0xc3d   :  { %v1216_v11 = vpop.f32.mrf.mxu2 }
 0xc45   :  { %v1218_v12 = vpop.f32.mrf.mxu2 }
 0xc46   :  { %v1256_v20 = vpack.c.bf16 %v1218_v12, %v1216_v11 }
 0xc4d   :  { %v1221_v45 = vpop.f32.mrf.mxu2 }
 0xc55   :  { %v1223_v47 = vpop.f32.mrf.mxu2 }
 0xc56   :  { %v1257_v46 = vpack.c.bf16 %v1223_v47, %v1221_v45 }
 0xc5d   :  { %v1226_v48 = vpop.f32.mrf.mxu2 }
 0xc65   :  { %v1228_v13 = vpop.f32.mrf.mxu2 }
 0xc66   :  { %v1258_v44 = vpack.c.bf16 %v1228_v13, %v1226_v48 }
 0xc6d   :  { %v1231_v14 = vpop.f32.mrf.mxu2 }
 0xc75   :  { %v1233_v15 = vpop.f32.mrf.mxu2 }
 0xc76   :  { %v1259_v43 = vpack.c.bf16 %v1233_v15, %v1231_v14 }
 0xc7d   :  { %v1236_v49 = vpop.f32.mrf.mxu2 }
 0xc85   :  { %v1238_v16 = vpop.f32.mrf.mxu2 }
 0xc86   :  { %v1260_v42 = vpack.c.bf16 %v1238_v16, %v1236_v49 }
 0xc8d   :  { %v1241_v57 = vpop.f32.mrf.mxu2 }
 0xc95   :  { %v1243_v50 = vpop.f32.mrf.mxu2 }
 0xc96   :  { %v1261_v53 = vpack.c.bf16 %v1243_v50, %v1241_v57 }
 0xc9d   :  { %v1246_v52 = vpop.f32.mrf.mxu2 }
 0xca5   :  { %v1248_v17 = vpop.f32.mrf.mxu2 }
 0xca6   :  { %v1262_v41 = vpack.c.bf16 %v1248_v17, %v1246_v52 }
 0xcad   :  { %v1251_v18 = vpop.f32.mrf.mxu2 }
 0xcb5   :  { %v1253_v40 = vpop.f32.mrf.mxu2 }
 0xcb6   :  { %v1263_v19 = vpack.c.bf16 %v1253_v40, %v1251_v18 }
 0xcb8   :  { %1264 = vmatpush.bf16.msrb.mxu3 %v1263_v19 }
 0xcbc   :  { %1265 = vmatpush.bf16.msrb.mxu3 %v1262_v41 }
 0xcc0   :  { %1266 = vmatpush.bf16.msrb.mxu3 %v1261_v53 }
 0xcc4   :  { %1267 = vmatpush.bf16.msrb.mxu3 %v1260_v42 }
 0xcc8   :  { %1268 = vmatpush.bf16.msrb.mxu3 %v1259_v43 }
 0xccc   :  { %1269 = vmatpush.bf16.msrb.mxu3 %v1258_v44 }
 0xcd0   :  { %1270 = vmatpush.bf16.msrb.mxu3 %v1257_v46 }
 0xcd4   :  { %1271 = vmatpush.bf16.msrb.mxu3 %v1256_v20 }
 0xcd7   :  { %1272 = vmatmul.bf16.vlgmr.msrb.gmra.mxu3 %v2482_v23 }
 0xce7   :  { %1277 = vmatmul.bf16.gmra.mxu3 %v2488_v24 }
 0xcf7   :  { %1282 = vmatmul.bf16.gmra.mxu3 %v2494_v25 }
 0xd07   :  { %1287 = vmatmul.bf16.gmra.mxu3 %v2500_v27 }
 0xd17   :  { %1292 = vmatmul.bf16.gmra.mxu3 %v2506_v28 }
 0xd27   :  { %1297 = vmatmul.bf16.gmra.mxu3 %v2512_v29 }
 0xd37   :  { %1302 = vmatmul.bf16.gmra.mxu3 %v2518_v30 }
 0xd47   :  { %1307 = vmatmul.bf16.gmra.mxu3 %v2524_v31 }
 0xd5a   :  { %v1273_v51 = vpop.f32.mrf.mxu3 }
 0xd5b   :  { %v1274_v21 = vadd.f32 %v2554_v10, %v1273_v51 }
 0xd5d   :  { %v1313_v54 = vmax.f32 %v1274_v21, 0.0 }
 0xd62   :  { %v1275_v55 = vpop.f32.mrf.mxu3 }
 0xd63   :  { %v1276_v22 = vadd.f32 %v2554_v10, %v1275_v55 }
 0xd65   :  { %v1314_v32 = vmax.f32 %v1276_v22, 0.0 }
 0xd67   :  { %v1329_v33 = vpack.c.bf16 %v1314_v32, %v1313_v54 }
 0xd69   :  { %1345 = vmatmul.bf16.vlgmr.msra.gmra.mxu0 %v1329_v33 }
 0xd6a   :  { %v1278_v34 = vpop.f32.mrf.mxu3 }
 0xd6b   :  { %v1279_v35 = vadd.f32 %v2554_v10, %v1278_v34 }
 0xd6d   :  { %v1315_v38 = vmax.f32 %v1279_v35, 0.0 }
 0xd72   :  { %v1280_v36 = vpop.f32.mrf.mxu3 }
 0xd73   :  { %v1281_v37 = vadd.f32 %v2554_v10, %v1280_v36 }
 0xd75   :  { %v1316_v39 = vmax.f32 %v1281_v37, 0.0 }
 0xd77   :  { %v1330_v56 = vpack.c.bf16 %v1316_v39, %v1315_v38 }
 0xd79   :  { %1350 = vmatmul.bf16.gmra.mxu0 %v1330_v56 }
 0xd7a   :  { %v1283_v58 = vpop.f32.mrf.mxu3 }
 0xd7b   :  { %v1284_v59 = vadd.f32 %v2554_v10, %v1283_v58 }
 0xd7d   :  { %v1317_v62 = vmax.f32 %v1284_v59, 0.0 }
 0xd82   :  { %v1285_v60 = vpop.f32.mrf.mxu3 }
 0xd83   :  { %v1286_v61 = vadd.f32 %v2554_v10, %v1285_v60 }
 0xd85   :  { %v1318_v63 = vmax.f32 %v1286_v61, 0.0 }
 0xd87   :  { %v1331_v0 = vpack.c.bf16 %v1318_v63, %v1317_v62 }
 0xd89   :  { %1355 = vmatmul.bf16.gmra.mxu0 %v1331_v0 }
 0xd8a   :  { %v1288_v26 = vpop.f32.mrf.mxu3 }
 0xd8b   :  { %v1289_v1 = vadd.f32 %v2554_v10, %v1288_v26 }
 0xd8d   :  { %v1319_v4 = vmax.f32 %v1289_v1, 0.0 }
 0xd92   :  { %v1290_v2 = vpop.f32.mrf.mxu3 }
 0xd93   :  { %v1291_v3 = vadd.f32 %v2554_v10, %v1290_v2 }
 0xd95   :  { %v1320_v5 = vmax.f32 %v1291_v3, 0.0 }
 0xd97   :  { %v1332_v6 = vpack.c.bf16 %v1320_v5, %v1319_v4  ;;  %v2035_v4 = vld [vmem:[%s2886_s6 + $0x38] sm:$0xff]  ;;  %v2034_v5 = vld [vmem:[%s2886_s6 + $0x30] sm:$0xff] }
 0xd98   :  { %1531 = vmatpush.bf16.msra.mxu2 %v2035_v4 }
 0xd99   :  { %1360 = vmatmul.bf16.gmra.mxu0 %v1332_v6  ;;  %v2033_v6 = vld [vmem:[%s2886_s6 + $0x28] sm:$0xff] }
 0xd9a   :  { %v1293_v7 = vpop.f32.mrf.mxu3 }
 0xd9b   :  { %v1294_v8 = vadd.f32 %v2554_v10, %v1293_v7  ;;  %v2032_v7 = vld [vmem:[%s2886_s6 + $0x20] sm:$0xff] }
 0xd9c   :  { %1532 = vmatpush.bf16.msra.mxu2 %v2034_v5 }
 0xd9d   :  { %v1321_v12 = vmax.f32 %v1294_v8, 0.0  ;;  %v2031_v8 = vld [vmem:[%s2886_s6 + $0x18] sm:$0xff] }
 0xda0   :  { %1533 = vmatpush.bf16.msra.mxu2 %v2033_v6 }
 0xda2   :  { %v1295_v9 = vpop.f32.mrf.mxu3 }
 0xda3   :  { %v1296_v11 = vadd.f32 %v2554_v10, %v1295_v9  ;;  %v2030_v9 = vld [vmem:[%s2886_s6 + $0x10] sm:$0xff] }
 0xda4   :  { %1534 = vmatpush.bf16.msra.mxu2 %v2032_v7 }
 0xda5   :  { %v1322_v45 = vmax.f32 %v1296_v11, 0.0  ;;  %v2029_v11 = vld [vmem:[%s2886_s6 + $0x8] sm:$0xff] }
 0xda7   :  { %v1333_v47 = vpack.c.bf16 %v1322_v45, %v1321_v12  ;;  %v2028_v12 = vld [vmem:[%s2886_s6] sm:$0xff] }
 0xda8   :  { %1535 = vmatpush.bf16.msra.mxu2 %v2031_v8 }
 0xda9   :  { %1365 = vmatmul.bf16.gmra.mxu0 %v1333_v47 }
 0xdaa   :  { %v1298_v48 = vpop.f32.mrf.mxu3 }
 0xdab   :  { %v1299_v13 = vadd.f32 %v2554_v10, %v1298_v48 }
 0xdac   :  { %1536 = vmatpush.bf16.msra.mxu2 %v2030_v9 }
 0xdad   :  { %v1323_v49 = vmax.f32 %v1299_v13, 0.0 }
 0xdb0   :  { %1537 = vmatpush.bf16.msra.mxu2 %v2029_v11 }
 0xdb2   :  { %v1300_v14 = vpop.f32.mrf.mxu3 }
 0xdb3   :  { %v1301_v15 = vadd.f32 %v2554_v10, %v1300_v14 }
 0xdb4   :  { %1538 = vmatpush.bf16.msra.mxu2 %v2028_v12 }
 0xdb5   :  { %v1324_v16 = vmax.f32 %v1301_v15, 0.0 }
 0xdb7   :  { %v1334_v57 = vpack.c.bf16 %v1324_v16, %v1323_v49 }
 0xdb9   :  { %1370 = vmatmul.bf16.gmra.mxu0 %v1334_v57 }
 0xdba   :  { %v1303_v50 = vpop.f32.mrf.mxu3 }
 0xdbb   :  { %v1304_v52 = vadd.f32 %v2554_v10, %v1303_v50 }
 0xdbd   :  { %v1325_v40 = vmax.f32 %v1304_v52, 0.0 }
 0xdc2   :  { %v1305_v17 = vpop.f32.mrf.mxu3 }
 0xdc3   :  { %v1306_v18 = vadd.f32 %v2554_v10, %v1305_v17 }
 0xdc5   :  { %v1326_v19 = vmax.f32 %v1306_v18, 0.0 }
 0xdc7   :  { %v1335_v41 = vpack.c.bf16 %v1326_v19, %v1325_v40 }
 0xdc9   :  { %1375 = vmatmul.bf16.gmra.mxu0 %v1335_v41 }
 0xdca   :  { %v1308_v53 = vpop.f32.mrf.mxu3 }
 0xdcb   :  { %v1309_v42 = vadd.f32 %v2554_v10, %v1308_v53 }
 0xdcd   :  { %v1327_v46 = vmax.f32 %v1309_v42, 0.0 }
 0xdd2   :  { %v1310_v43 = vpop.f32.mrf.mxu3 }
 0xdd3   :  { %v1311_v44 = vadd.f32 %v2554_v10, %v1310_v43 }
 0xdd5   :  { %v1328_v20 = vmax.f32 %v1311_v44, 0.0 }
 0xdd7   :  { %v1336_v51 = vpack.c.bf16 %v1328_v20, %v1327_v46 }
 0xdd9   :  { %1380 = vmatmul.bf16.gmra.mxu0 %v1336_v51 }
 0xde6   :  { %v1346_v21 = vpop.f32.mrf.mxu0 }
 0xdee   :  { %v1348_v55 = vpop.f32.mrf.mxu0 }
 0xdef   :  { %v1386_v22 = vpack.c.bf16 %v1348_v55, %v1346_v21 }
 0xdf6   :  { %v1351_v54 = vpop.f32.mrf.mxu0 }
 0xdfe   :  { %v1353_v32 = vpop.f32.mrf.mxu0 }
 0xdff   :  { %v1387_v33 = vpack.c.bf16 %v1353_v32, %v1351_v54 }
 0xe06   :  { %v1356_v34 = vpop.f32.mrf.mxu0 }
 0xe0e   :  { %v1358_v35 = vpop.f32.mrf.mxu0 }
 0xe0f   :  { %v1388_v36 = vpack.c.bf16 %v1358_v35, %v1356_v34 }
 0xe16   :  { %v1361_v37 = vpop.f32.mrf.mxu0 }
 0xe1e   :  { %v1363_v38 = vpop.f32.mrf.mxu0 }
 0xe1f   :  { %v1389_v39 = vpack.c.bf16 %v1363_v38, %v1361_v37 }
 0xe26   :  { %v1366_v56 = vpop.f32.mrf.mxu0 }
 0xe2e   :  { %v1368_v58 = vpop.f32.mrf.mxu0 }
 0xe2f   :  { %v1390_v3 = vpack.c.bf16 %v1368_v58, %v1366_v56 }
 0xe36   :  { %v1371_v59 = vpop.f32.mrf.mxu0 }
 0xe3e   :  { %v1373_v60 = vpop.f32.mrf.mxu0 }
 0xe3f   :  { %v1391_v2 = vpack.c.bf16 %v1373_v60, %v1371_v59 }
 0xe46   :  { %v1376_v61 = vpop.f32.mrf.mxu0 }
 0xe4e   :  { %v1378_v62 = vpop.f32.mrf.mxu0 }
 0xe4f   :  { %v1392_v1 = vpack.c.bf16 %v1378_v62, %v1376_v61 }
 0xe56   :  { %v1381_v63 = vpop.f32.mrf.mxu0 }
 0xe5e   :  { %v1383_v0 = vpop.f32.mrf.mxu0 }
 0xe5f   :  { %v1393_v26 = vpack.c.bf16 %v1383_v0, %v1381_v63 }
 0xe61   :  { %1394 = vmatpush.bf16.msra.mxu1 %v1393_v26 }
 0xe65   :  { %1395 = vmatpush.bf16.msra.mxu1 %v1392_v1 }
 0xe69   :  { %1396 = vmatpush.bf16.msra.mxu1 %v1391_v2 }
 0xe6d   :  { %1397 = vmatpush.bf16.msra.mxu1 %v1390_v3 }
 0xe71   :  { %1398 = vmatpush.bf16.msra.mxu1 %v1389_v39 }
 0xe75   :  { %1399 = vmatpush.bf16.msra.mxu1 %v1388_v36 }
 0xe79   :  { %1400 = vmatpush.bf16.msra.mxu1 %v1387_v33 }
 0xe7d   :  { %1401 = vmatpush.bf16.msra.mxu1 %v1386_v22 }
 0xe80   :  { %1402 = vmatmul.bf16.vlgmr.msra.gmra.mxu1 %v2482_v23 }
 0xe90   :  { %1407 = vmatmul.bf16.gmra.mxu1 %v2488_v24 }
 0xea0   :  { %1412 = vmatmul.bf16.gmra.mxu1 %v2494_v25 }
 0xeb0   :  { %1417 = vmatmul.bf16.gmra.mxu1 %v2500_v27 }
 0xec0   :  { %1422 = vmatmul.bf16.gmra.mxu1 %v2506_v28 }
 0xed0   :  { %1427 = vmatmul.bf16.gmra.mxu1 %v2512_v29 }
 0xee0   :  { %1432 = vmatmul.bf16.gmra.mxu1 %v2518_v30 }
 0xef0   :  { %1437 = vmatmul.bf16.gmra.mxu1 %v2524_v31 }
 0xefd   :  { %v1403_v45 = vpop.f32.mrf.mxu1 }
 0xefe   :  { %v1404_v47 = vadd.f32 %v2554_v10, %v1403_v45 }
 0xf00   :  { %v1443_v14 = vmax.f32 %v1404_v47, 0.0 }
 0xf05   :  { %v1405_v48 = vpop.f32.mrf.mxu1 }
 0xf06   :  { %v1406_v13 = vadd.f32 %v2554_v10, %v1405_v48 }
 0xf08   :  { %v1444_v15 = vmax.f32 %v1406_v13, 0.0 }
 0xf0a   :  { %v1459_v49 = vpack.c.bf16 %v1444_v15, %v1443_v14 }
 0xf0c   :  { %1539 = vmatmul.bf16.vlgmr.msra.gmra.mxu2 %v1459_v49 }
 0xf0d   :  { %v1408_v16 = vpop.f32.mrf.mxu1 }
 0xf0e   :  { %v1409_v57 = vadd.f32 %v2554_v10, %v1408_v16 }
 0xf10   :  { %v1445_v17 = vmax.f32 %v1409_v57, 0.0 }
 0xf15   :  { %v1410_v50 = vpop.f32.mrf.mxu1 }
 0xf16   :  { %v1411_v52 = vadd.f32 %v2554_v10, %v1410_v50 }
 0xf18   :  { %v1446_v18 = vmax.f32 %v1411_v52, 0.0 }
 0xf1a   :  { %v1460_v40 = vpack.c.bf16 %v1446_v18, %v1445_v17 }
 0xf1c   :  { %1544 = vmatmul.bf16.gmra.mxu2 %v1460_v40 }
 0xf1d   :  { %v1413_v19 = vpop.f32.mrf.mxu1 }
 0xf1e   :  { %v1414_v41 = vadd.f32 %v2554_v10, %v1413_v19 }
 0xf20   :  { %v1447_v43 = vmax.f32 %v1414_v41, 0.0 }
 0xf25   :  { %v1415_v53 = vpop.f32.mrf.mxu1 }
 0xf26   :  { %v1416_v42 = vadd.f32 %v2554_v10, %v1415_v53 }
 0xf28   :  { %v1448_v44 = vmax.f32 %v1416_v42, 0.0 }
 0xf2a   :  { %v1461_v46 = vpack.c.bf16 %v1448_v44, %v1447_v43 }
 0xf2c   :  { %1549 = vmatmul.bf16.gmra.mxu2 %v1461_v46 }
 0xf2d   :  { %v1418_v20 = vpop.f32.mrf.mxu1 }
 0xf2e   :  { %v1419_v51 = vadd.f32 %v2554_v10, %v1418_v20 }
 0xf30   :  { %v1449_v22 = vmax.f32 %v1419_v51, 0.0 }
 0xf35   :  { %v1420_v21 = vpop.f32.mrf.mxu1 }
 0xf36   :  { %v1421_v55 = vadd.f32 %v2554_v10, %v1420_v21 }
 0xf38   :  { %v1450_v54 = vmax.f32 %v1421_v55, 0.0  ;;  %v1637_v55 = vlaneseq }
 0xf3a   :  { %v1462_v32 = vpack.c.bf16 %v1450_v54, %v1449_v22  ;;  %v2652_v22 = vand.u32 127, %v1637_v55 }
 0xf3c   :  { %1554 = vmatmul.bf16.gmra.mxu2 %v1462_v32  ;;  %vm1639_vm0 = vcmp.lt.s32.totalorder %v2652_v22, 8 }
 0xf3d   :  { %v1423_v33 = vpop.f32.mrf.mxu1 }
 0xf3e   :  { %v1424_v34 = vadd.f32 %v2554_v10, %v1423_v33 }
 0xf40   :  { %v1451_v37 = vmax.f32 %v1424_v34, 0.0 }
 0xf45   :  { %v1425_v35 = vpop.f32.mrf.mxu1 }
 0xf46   :  { %v1426_v36 = vadd.f32 %v2554_v10, %v1425_v35 }
 0xf48   :  { %v1452_v38 = vmax.f32 %v1426_v36, 0.0 }
 0xf4a   :  { %v1463_v39 = vpack.c.bf16 %v1452_v38, %v1451_v37 }
 0xf4c   :  { %1559 = vmatmul.bf16.gmra.mxu2 %v1463_v39 }
 0xf4d   :  { %v1428_v56 = vpop.f32.mrf.mxu1 }
 0xf4e   :  { %v1429_v58 = vadd.f32 %v2554_v10, %v1428_v56 }
 0xf50   :  { %v1453_v61 = vmax.f32 %v1429_v58, 0.0 }
 0xf55   :  { %v1430_v59 = vpop.f32.mrf.mxu1 }
 0xf56   :  { %v1431_v60 = vadd.f32 %v2554_v10, %v1430_v59 }
 0xf58   :  { %v1454_v62 = vmax.f32 %v1431_v60, 0.0 }
 0xf5a   :  { %v1464_v63 = vpack.c.bf16 %v1454_v62, %v1453_v61 }
 0xf5c   :  { %1564 = vmatmul.bf16.gmra.mxu2 %v1464_v63 }
 0xf5d   :  { %v1433_v0 = vpop.f32.mrf.mxu1 }
 0xf5e   :  { %v1434_v26 = vadd.f32 %v2554_v10, %v1433_v0 }
 0xf60   :  { %v1455_v3 = vmax.f32 %v1434_v26, 0.0 }
 0xf65   :  { %v1435_v1 = vpop.f32.mrf.mxu1 }
 0xf66   :  { %v1436_v2 = vadd.f32 %v2554_v10, %v1435_v1 }
 0xf68   :  { %v1456_v4 = vmax.f32 %v1436_v2, 0.0 }
 0xf6a   :  { %v1465_v5 = vpack.c.bf16 %v1456_v4, %v1455_v3 }
 0xf6c   :  { %1569 = vmatmul.bf16.gmra.mxu2 %v1465_v5 }
 0xf6d   :  { %v1438_v6 = vpop.f32.mrf.mxu1 }
 0xf6e   :  { %v1439_v7 = vadd.f32 %v2554_v10, %v1438_v6 }
 0xf70   :  { %v1457_v11 = vmax.f32 %v1439_v7, 0.0 }
 0xf75   :  { %v1440_v8 = vpop.f32.mrf.mxu1 }
 0xf76   :  { %v1441_v9 = vadd.f32 %v2554_v10, %v1440_v8 }
 0xf78   :  { %v1458_v12 = vmax.f32 %v1441_v9, 0.0 }
 0xf7a   :  { %v1466_v45 = vpack.c.bf16 %v1458_v12, %v1457_v11 }
 0xf7c   :  { %1574 = vmatmul.bf16.gmra.mxu2 %v1466_v45 }
 0xf8f   :  { %v1540_v47 = vpop.f32.mrf.mxu2 }
 0xf97   :  { %v1542_v48 = vpop.f32.mrf.mxu2 }
 0xf98   :  { %v1580_v13 = vpack.c.bf16 %v1542_v48, %v1540_v47 }
 0xf9f   :  { %v1545_v14 = vpop.f32.mrf.mxu2 }
 0xfa7   :  { %v1547_v15 = vpop.f32.mrf.mxu2 }
 0xfa8   :  { %v1581_v49 = vpack.c.bf16 %v1547_v15, %v1545_v14 }
 0xfaf   :  { %v1550_v16 = vpop.f32.mrf.mxu2 }
 0xfb7   :  { %v1552_v57 = vpop.f32.mrf.mxu2 }
 0xfb8   :  { %v1582_v50 = vpack.c.bf16 %v1552_v57, %v1550_v16 }
 0xfbf   :  { %v1555_v52 = vpop.f32.mrf.mxu2 }
 0xfc7   :  { %v1557_v17 = vpop.f32.mrf.mxu2 }
 0xfc8   :  { %v1583_v18 = vpack.c.bf16 %v1557_v17, %v1555_v52 }
 0xfcf   :  { %v1560_v40 = vpop.f32.mrf.mxu2 }
 0xfd7   :  { %v1562_v19 = vpop.f32.mrf.mxu2 }
 0xfd8   :  { %v1584_v21 = vpack.c.bf16 %v1562_v19, %v1560_v40 }
 0xfdf   :  { %v1565_v41 = vpop.f32.mrf.mxu2 }
 0xfe7   :  { %v1567_v10 = vpop.f32.mrf.mxu2 }
 0xfe8   :  { %v1585_v51 = vpack.c.bf16 %v1567_v10, %v1565_v41 }
 0xfef   :  { %v1570_v53 = vpop.f32.mrf.mxu2 }
 0xff7   :  { %v1572_v42 = vpop.f32.mrf.mxu2 }
 0xff8   :  { %v1586_v20 = vpack.c.bf16 %v1572_v42, %v1570_v53 }
 0xfff   :  { %v1575_v43 = vpop.f32.mrf.mxu2 }
0x1007   :  { %v1577_v44 = vpop.f32.mrf.mxu2 }
0x1008   :  { %v1587_v46 = vpack.c.bf16 %v1577_v44, %v1575_v43 }
0x100a   :  { %1588 = vmatpush.bf16.msra.mxu3 %v1587_v46 }
0x100e   :  { %1589 = vmatpush.bf16.msra.mxu3 %v1586_v20 }
0x1012   :  { %1590 = vmatpush.bf16.msra.mxu3 %v1585_v51 }
0x1016   :  { %1591 = vmatpush.bf16.msra.mxu3 %v1584_v21 }
0x101a   :  { %1592 = vmatpush.bf16.msra.mxu3 %v1583_v18 }
0x101e   :  { %1593 = vmatpush.bf16.msra.mxu3 %v1582_v50 }
0x1022   :  { %1594 = vmatpush.bf16.msra.mxu3 %v1581_v49 }
0x1026   :  { %1595 = vmatpush.bf16.msra.mxu3 %v1580_v13 }
0x1029   :  { %1596 = vmatmul.bf16.vlgmr.msra.gmra.mxu3 %v2482_v23  ;;  %v2657_v23 = vld [vmem:[%s2887_s7] ss:$0 sm:$0xff] }
0x1039   :  { %1601 = vmatmul.bf16.gmra.mxu3 %v2488_v24 }
0x1049   :  { %1606 = vmatmul.bf16.gmra.mxu3 %v2494_v25 }
0x1059   :  { %1611 = vmatmul.bf16.gmra.mxu3 %v2500_v27 }
0x1069   :  { %1616 = vmatmul.bf16.gmra.mxu3 %v2506_v28 }
0x1079   :  { %1621 = vmatmul.bf16.gmra.mxu3 %v2512_v29 }
0x1089   :  { %1626 = vmatmul.bf16.gmra.mxu3 %v2518_v30 }
0x1099   :  { %1631 = vmatmul.bf16.gmra.mxu3 %v2524_v31 }
0x10ac   :  { %v1597_v24 = vpop.f32.mrf.mxu3 }
0x10ad   :  { %v1598_v25 = vadd.f32 %v2657_v23, %v1597_v24 }
0x10af   :  { %v1640_v27 = vsel %vm1639_vm0, %v1598_v25, -1e+30 }
0x10b0   :  { %1656 = vmax.xlane.f32.xlu0 %v1640_v27 }
0x10b4   :  { %v1599_v28 = vpop.f32.mrf.mxu3 }
0x10b5   :  { %v1600_v29 = vadd.f32 %v2657_v23, %v1599_v28 }
0x10b7   :  { %v2666_v30 = vsel %vm1639_vm0, %v1600_v29, -1e+30 }
0x10b8   :  { %1658 = vmax.xlane.f32.xlu0 %v2666_v30 }
0x10bc   :  { %v1602_v31 = vpop.f32.mrf.mxu3 }
0x10bd   :  { %v1603_v54 = vadd.f32 %v2657_v23, %v1602_v31 }
0x10bf   :  { %v2672_v32 = vsel %vm1639_vm0, %v1603_v54, -1e+30 }
0x10c0   :  { %1660 = vmax.xlane.f32.xlu1 %v2672_v32 }
0x10c4   :  { %v1604_v33 = vpop.f32.mrf.mxu3 }
0x10c5   :  { %v1605_v34 = vadd.f32 %v2657_v23, %v1604_v33 }
0x10c7   :  { %v2678_v35 = vsel %vm1639_vm0, %v1605_v34, -1e+30 }
0x10c8   :  { %1662 = vmax.xlane.f32.xlu1 %v2678_v35 }
0x10cc   :  { %v1607_v36 = vpop.f32.mrf.mxu3 }
0x10cd   :  { %v1608_v37 = vadd.f32 %v2657_v23, %v1607_v36 }
0x10cf   :  { %v2684_v38 = vsel %vm1639_vm0, %v1608_v37, -1e+30 }
0x10d0   :  { %1664 = vmax.xlane.f32.xlu2 %v2684_v38 }
0x10d4   :  { %v1609_v39 = vpop.f32.mrf.mxu3 }
0x10d5   :  { %v1610_v56 = vadd.f32 %v2657_v23, %v1609_v39 }
0x10d7   :  { %v2690_v58 = vsel %vm1639_vm0, %v1610_v56, -1e+30 }
0x10d8   :  { %1666 = vmax.xlane.f32.xlu2 %v2690_v58 }
0x10dc   :  { %v1612_v59 = vpop.f32.mrf.mxu3 }
0x10dd   :  { %v1613_v60 = vadd.f32 %v2657_v23, %v1612_v59 }
0x10df   :  { %v2696_v61 = vsel %vm1639_vm0, %v1613_v60, -1e+30 }
0x10e0   :  { %1668 = vmax.xlane.f32.xlu0 %v2696_v61 }
0x10e4   :  { %v1614_v62 = vpop.f32.mrf.mxu3 }
0x10e5   :  { %v1615_v63 = vadd.f32 %v2657_v23, %v1614_v62 }
0x10e7   :  { %v2702_v0 = vsel %vm1639_vm0, %v1615_v63, -1e+30 }
0x10e8   :  { %1670 = vmax.xlane.f32.xlu1 %v2702_v0 }
0x10ec   :  { %v1617_v26 = vpop.f32.mrf.mxu3 }
0x10ed   :  { %v1618_v1 = vadd.f32 %v2657_v23, %v1617_v26 }
0x10ef   :  { %v2708_v2 = vsel %vm1639_vm0, %v1618_v1, -1e+30 }
0x10f0   :  { %1672 = vmax.xlane.f32.xlu2 %v2708_v2 }
0x10f4   :  { %v1619_v3 = vpop.f32.mrf.mxu3 }
0x10f5   :  { %v1620_v4 = vadd.f32 %v2657_v23, %v1619_v3 }
0x10f7   :  { %v2714_v5 = vsel %vm1639_vm0, %v1620_v4, -1e+30 }
0x10f8   :  { %1674 = vmax.xlane.f32.xlu0 %v2714_v5 }
0x10fc   :  { %v1622_v6 = vpop.f32.mrf.mxu3 }
0x10fd   :  { %v1623_v7 = vadd.f32 %v2657_v23, %v1622_v6 }
0x10ff   :  { %v2720_v8 = vsel %vm1639_vm0, %v1623_v7, -1e+30 }
0x1100   :  { %1676 = vmax.xlane.f32.xlu1 %v2720_v8 }
0x1104   :  { %v1624_v9 = vpop.f32.mrf.mxu3 }
0x1105   :  { %v1625_v11 = vadd.f32 %v2657_v23, %v1624_v9 }
0x1107   :  { %v2726_v12 = vsel %vm1639_vm0, %v1625_v11, -1e+30 }
0x1108   :  { %1678 = vmax.xlane.f32.xlu2 %v2726_v12 }
0x110c   :  { %v1627_v45 = vpop.f32.mrf.mxu3 }
0x110d   :  { %v1628_v47 = vadd.f32 %v2657_v23, %v1627_v45 }
0x110f   :  { %v2732_v48 = vsel %vm1639_vm0, %v1628_v47, -1e+30 }
0x1110   :  { %1680 = vmax.xlane.f32.xlu0 %v2732_v48 }
0x1114   :  { %v1629_v13 = vpop.f32.mrf.mxu3 }
0x1115   :  { %v1630_v14 = vadd.f32 %v2657_v23, %v1629_v13 }
0x1117   :  { %v2738_v15 = vsel %vm1639_vm0, %v1630_v14, -1e+30 }
0x1118   :  { %1682 = vmax.xlane.f32.xlu1 %v2738_v15 }
0x111c   :  { %v1632_v49 = vpop.f32.mrf.mxu3 }
0x111d   :  { %v1633_v16 = vadd.f32 %v2657_v23, %v1632_v49 }
0x111f   :  { %v2744_v57 = vsel %vm1639_vm0, %v1633_v16, -1e+30 }
0x1120   :  { %1684 = vmax.xlane.f32.xlu2 %v2744_v57 }
0x1123   :  { %v1657_v50 = vpop.xlane.xlu0 %1656 }
0x1124   :  { %v2747_v52 = vsub.f32 %v1640_v27, %v1657_v50  ;;  %v1634_v17 = vpop.f32.mrf.mxu3 }
0x1125   :  { %v1635_v18 = vadd.f32 %v2657_v23, %v1634_v17 }
0x1126   :  { %v1704_v40 = vmul.f32 1.442695, %v2747_v52 }
0x1127   :  { %v2753_v19 = vsel %vm1639_vm0, %v1635_v18, -1e+30 }
0x1128   :  { %2039 = vpow2.f32 %v1704_v40  ;;  %1686 = vmax.xlane.f32.xlu0 %v2753_v19 }
0x112b   :  { %v1659_v41 = vpop.xlane.xlu0 %1658 }
0x112c   :  { %v2757_v10 = vsub.f32 %v2666_v30, %v1659_v41 }
0x112e   :  { %v2040_v53 = vpop.eup %2039  ;;  %v1706_v42 = vmul.f32 1.442695, %v2757_v10 }
0x112f   :  { %1736 = vadd.xlane.f32.xlu1 %v2040_v53 }
0x1130   :  { %2041 = vpow2.f32 %v1706_v42 }
0x1133   :  { %v1661_v43 = vpop.xlane.xlu1 %1660 }
0x1134   :  { %v2761_v44 = vsub.f32 %v2672_v32, %v1661_v43 }
0x1136   :  { %v2042_v46 = vpop.eup %2041  ;;  %v1708_v20 = vmul.f32 1.442695, %v2761_v44 }
0x1137   :  { %1738 = vadd.xlane.f32.xlu2 %v2042_v46 }
0x1138   :  { %2043 = vpow2.f32 %v1708_v20 }
0x113b   :  { %v1663_v51 = vpop.xlane.xlu1 %1662 }
0x113c   :  { %v2765_v21 = vsub.f32 %v2678_v35, %v1663_v51 }
0x113e   :  { %v2044_v55 = vpop.eup %2043  ;;  %v1710_v22 = vmul.f32 1.442695, %v2765_v21 }
0x113f   :  { %1740 = vadd.xlane.f32.xlu0 %v2044_v55 }
0x1140   :  { %2045 = vpow2.f32 %v1710_v22 }
0x1143   :  { %v1665_v23 = vpop.xlane.xlu2 %1664 }
0x1144   :  { %v2769_v24 = vsub.f32 %v2684_v38, %v1665_v23 }
0x1146   :  { %v2046_v25 = vpop.eup %2045  ;;  %v1712_v27 = vmul.f32 1.442695, %v2769_v24 }
0x1147   :  { %1742 = vadd.xlane.f32.xlu1 %v2046_v25 }
0x1148   :  { %2047 = vpow2.f32 %v1712_v27 }
0x114b   :  { %v1667_v28 = vpop.xlane.xlu2 %1666 }
0x114c   :  { %v2773_v29 = vsub.f32 %v2690_v58, %v1667_v28 }
0x114e   :  { %v2048_v30 = vpop.eup %2047  ;;  %v1714_v31 = vmul.f32 1.442695, %v2773_v29 }
0x114f   :  { %1744 = vadd.xlane.f32.xlu2 %v2048_v30 }
0x1150   :  { %2049 = vpow2.f32 %v1714_v31 }
0x1153   :  { %v1669_v54 = vpop.xlane.xlu0 %1668 }
0x1154   :  { %v2777_v32 = vsub.f32 %v2696_v61, %v1669_v54 }
0x1156   :  { %v2050_v33 = vpop.eup %2049  ;;  %v1716_v34 = vmul.f32 1.442695, %v2777_v32 }
0x1157   :  { %1746 = vadd.xlane.f32.xlu0 %v2050_v33 }
0x1158   :  { %2051 = vpow2.f32 %v1716_v34 }
0x115b   :  { %v1671_v35 = vpop.xlane.xlu1 %1670 }
0x115c   :  { %v2781_v36 = vsub.f32 %v2702_v0, %v1671_v35 }
0x115e   :  { %v2052_v37 = vpop.eup %2051  ;;  %v1718_v38 = vmul.f32 1.442695, %v2781_v36 }
0x115f   :  { %1748 = vadd.xlane.f32.xlu1 %v2052_v37 }
0x1160   :  { %2053 = vpow2.f32 %v1718_v38 }
0x1163   :  { %v1673_v39 = vpop.xlane.xlu2 %1672 }
0x1164   :  { %v2785_v56 = vsub.f32 %v2708_v2, %v1673_v39 }
0x1166   :  { %v2054_v58 = vpop.eup %2053  ;;  %v1720_v59 = vmul.f32 1.442695, %v2785_v56 }
0x1167   :  { %1750 = vadd.xlane.f32.xlu2 %v2054_v58 }
0x1168   :  { %2055 = vpow2.f32 %v1720_v59 }
0x116b   :  { %v1675_v60 = vpop.xlane.xlu0 %1674 }
0x116c   :  { %v2789_v61 = vsub.f32 %v2714_v5, %v1675_v60 }
0x116e   :  { %v2056_v62 = vpop.eup %2055  ;;  %v1722_v63 = vmul.f32 1.442695, %v2789_v61 }
0x116f   :  { %1752 = vadd.xlane.f32.xlu0 %v2056_v62 }
0x1170   :  { %2057 = vpow2.f32 %v1722_v63 }
0x1173   :  { %v1677_v0 = vpop.xlane.xlu1 %1676 }
0x1174   :  { %v2793_v26 = vsub.f32 %v2720_v8, %v1677_v0 }
0x1176   :  { %v2058_v1 = vpop.eup %2057  ;;  %v1724_v2 = vmul.f32 1.442695, %v2793_v26 }
0x1177   :  { %1754 = vadd.xlane.f32.xlu1 %v2058_v1 }
0x1178   :  { %2059 = vpow2.f32 %v1724_v2 }
0x117b   :  { %v1679_v3 = vpop.xlane.xlu2 %1678 }
0x117c   :  { %v2797_v4 = vsub.f32 %v2726_v12, %v1679_v3 }
0x117e   :  { %v2060_v5 = vpop.eup %2059  ;;  %v1726_v6 = vmul.f32 1.442695, %v2797_v4 }
0x117f   :  { %1756 = vadd.xlane.f32.xlu2 %v2060_v5 }
0x1180   :  { %2061 = vpow2.f32 %v1726_v6 }
0x1183   :  { %v1681_v7 = vpop.xlane.xlu0 %1680 }
0x1184   :  { %v2801_v9 = vsub.f32 %v2732_v48, %v1681_v7 }
0x1186   :  { %v2062_v8 = vpop.eup %2061  ;;  %v1728_v11 = vmul.f32 1.442695, %v2801_v9 }
0x1187   :  { %1758 = vadd.xlane.f32.xlu0 %v2062_v8 }
0x1188   :  { %2063 = vpow2.f32 %v1728_v11 }
0x118b   :  { %v1683_v45 = vpop.xlane.xlu1 %1682 }
0x118c   :  { %v2805_v47 = vsub.f32 %v2738_v15, %v1683_v45 }
0x118e   :  { %v2064_v12 = vpop.eup %2063  ;;  %v1730_v13 = vmul.f32 1.442695, %v2805_v47 }
0x118f   :  { %1760 = vadd.xlane.f32.xlu1 %v2064_v12 }
0x1190   :  { %2065 = vpow2.f32 %v1730_v13 }
0x1193   :  { %v1685_v14 = vpop.xlane.xlu2 %1684 }
0x1194   :  { %v2809_v49 = vsub.f32 %v2744_v57, %v1685_v14 }
0x1196   :  { %v2066_v48 = vpop.eup %2065  ;;  %v1732_v16 = vmul.f32 1.442695, %v2809_v49 }
0x1197   :  { %1762 = vadd.xlane.f32.xlu2 %v2066_v48 }
0x1198   :  { %2067 = vpow2.f32 %v1732_v16 }
0x119b   :  { %v1687_v50 = vpop.xlane.xlu0 %1686 }
0x119c   :  { %v2813_v17 = vsub.f32 %v2753_v19, %v1687_v50 }
0x119e   :  { %v2068_v15 = vpop.eup %2067  ;;  %v1734_v18 = vmul.f32 1.442695, %v2813_v17 }
0x119f   :  { %1764 = vadd.xlane.f32.xlu0 %v2068_v15 }
0x11a0   :  { %2069 = vpow2.f32 %v1734_v18 }
0x11a2   :  { %v1737_v40 = vpop.xlane.xlu1 %1736 }
0x11a3   :  { %2071 = vlog2.f32 %v1737_v40 }
0x11a6   :  { %v2070_v41 = vpop.eup %2069 }
0x11a7   :  { %1766 = vadd.xlane.f32.xlu1 %v2070_v41 }
0x11a9   :  { %v2072_v57 = vpop.eup %2071 }
0x11aa   :  { %v1769_v53 = vmul.f32 0.6931472, %v2072_v57  ;;  %v1739_v42 = vpop.xlane.xlu2 %1738 }
0x11ab   :  { %2073 = vlog2.f32 %v1739_v42 }
0x11ac   :  { %v1800_v43 = vsub.f32 %v2747_v52, %v1769_v53 }
0x11ae   :  { %1816 = vst [vmem:[%s2888_s8] sm:$0xff] %v1800_v43 }
0x11b1   :  { %v2074_v19 = vpop.eup %2073 }
0x11b2   :  { %v1771_v46 = vmul.f32 0.6931472, %v2074_v19  ;;  %v1741_v20 = vpop.xlane.xlu0 %1740 }
0x11b3   :  { %2075 = vlog2.f32 %v1741_v20 }
0x11b4   :  { %v1801_v51 = vsub.f32 %v2757_v10, %v1771_v46 }
0x11b6   :  { %1817 = vst [vmem:[%s2888_s8 + $0x8] sm:$0xff] %v1801_v51 }
0x11b9   :  { %v2076_v55 = vpop.eup %2075 }
0x11ba   :  { %v1773_v22 = vmul.f32 0.6931472, %v2076_v55  ;;  %v1743_v23 = vpop.xlane.xlu1 %1742 }
0x11bb   :  { %2077 = vlog2.f32 %v1743_v23 }
0x11bc   :  { %v1802_v52 = vsub.f32 %v2761_v44, %v1773_v22 }
0x11be   :  { %1818 = vst [vmem:[%s2888_s8 + $0x10] sm:$0xff] %v1802_v52 }
0x11c1   :  { %v2078_v25 = vpop.eup %2077 }
0x11c2   :  { %v1775_v27 = vmul.f32 0.6931472, %v2078_v25  ;;  %v1745_v28 = vpop.xlane.xlu2 %1744 }
0x11c3   :  { %2079 = vlog2.f32 %v1745_v28 }
0x11c4   :  { %v1803_v10 = vsub.f32 %v2765_v21, %v1775_v27 }
0x11c6   :  { %1819 = vst [vmem:[%s2888_s8 + $0x18] sm:$0xff] %v1803_v10 }
0x11c9   :  { %v2080_v30 = vpop.eup %2079 }
0x11ca   :  { %v1777_v31 = vmul.f32 0.6931472, %v2080_v30  ;;  %v1747_v54 = vpop.xlane.xlu0 %1746 }
0x11cb   :  { %2081 = vlog2.f32 %v1747_v54 }
0x11cc   :  { %v1804_v44 = vsub.f32 %v2769_v24, %v1777_v31 }
0x11ce   :  { %1820 = vst [vmem:[%s2888_s8 + $0x20] sm:$0xff] %v1804_v44 }
0x11d1   :  { %v2082_v33 = vpop.eup %2081 }
0x11d2   :  { %v1779_v34 = vmul.f32 0.6931472, %v2082_v33  ;;  %v1749_v35 = vpop.xlane.xlu1 %1748 }
0x11d3   :  { %2083 = vlog2.f32 %v1749_v35 }
0x11d4   :  { %v1805_v21 = vsub.f32 %v2773_v29, %v1779_v34 }
0x11d6   :  { %1821 = vst [vmem:[%s2888_s8 + $0x28] sm:$0xff] %v1805_v21 }
0x11d9   :  { %v2084_v37 = vpop.eup %2083 }
0x11da   :  { %v1781_v38 = vmul.f32 0.6931472, %v2084_v37  ;;  %v1751_v39 = vpop.xlane.xlu2 %1750 }
0x11db   :  { %2085 = vlog2.f32 %v1751_v39 }
0x11dc   :  { %v1806_v24 = vsub.f32 %v2777_v32, %v1781_v38 }
0x11de   :  { %1822 = vst [vmem:[%s2888_s8 + $0x30] sm:$0xff] %v1806_v24 }
0x11e1   :  { %v2086_v58 = vpop.eup %2085 }
0x11e2   :  { %v1783_v59 = vmul.f32 0.6931472, %v2086_v58  ;;  %v1753_v60 = vpop.xlane.xlu0 %1752 }
0x11e3   :  { %2087 = vlog2.f32 %v1753_v60 }
0x11e4   :  { %v1807_v29 = vsub.f32 %v2781_v36, %v1783_v59 }
0x11e6   :  { %1823 = vst [vmem:[%s2888_s8 + $0x38] sm:$0xff] %v1807_v29 }
0x11e9   :  { %v2088_v62 = vpop.eup %2087 }
0x11ea   :  { %v1785_v63 = vmul.f32 0.6931472, %v2088_v62  ;;  %v1755_v0 = vpop.xlane.xlu1 %1754 }
0x11eb   :  { %2089 = vlog2.f32 %v1755_v0 }
0x11ec   :  { %v1808_v32 = vsub.f32 %v2785_v56, %v1785_v63 }
0x11ee   :  { %1824 = vst [vmem:[%s2888_s8 + $0x40] sm:$0xff] %v1808_v32 }
0x11f1   :  { %v2090_v1 = vpop.eup %2089 }
0x11f2   :  { %v1787_v2 = vmul.f32 0.6931472, %v2090_v1  ;;  %v1757_v3 = vpop.xlane.xlu2 %1756 }
0x11f3   :  { %2091 = vlog2.f32 %v1757_v3 }
0x11f4   :  { %v1809_v36 = vsub.f32 %v2789_v61, %v1787_v2 }
0x11f6   :  { %1825 = vst [vmem:[%s2888_s8 + $0x48] sm:$0xff] %v1809_v36 }
0x11f9   :  { %v2092_v5 = vpop.eup %2091 }
0x11fa   :  { %v1789_v6 = vmul.f32 0.6931472, %v2092_v5  ;;  %v1759_v7 = vpop.xlane.xlu0 %1758 }
0x11fb   :  { %2093 = vlog2.f32 %v1759_v7 }
0x11fc   :  { %v1810_v56 = vsub.f32 %v2793_v26, %v1789_v6 }
0x11fe   :  { %1826 = vst [vmem:[%s2888_s8 + $0x50] sm:$0xff] %v1810_v56 }
0x1201   :  { %v2094_v8 = vpop.eup %2093 }
0x1202   :  { %v1791_v11 = vmul.f32 0.6931472, %v2094_v8  ;;  %v1761_v45 = vpop.xlane.xlu1 %1760 }
0x1203   :  { %2095 = vlog2.f32 %v1761_v45 }
0x1204   :  { %v1811_v61 = vsub.f32 %v2797_v4, %v1791_v11 }
0x1206   :  { %1827 = vst [vmem:[%s2888_s8 + $0x58] sm:$0xff] %v1811_v61 }
0x1209   :  { %v2096_v12 = vpop.eup %2095 }
0x120a   :  { %v1793_v13 = vmul.f32 0.6931472, %v2096_v12  ;;  %v1763_v14 = vpop.xlane.xlu2 %1762 }
0x120b   :  { %2097 = vlog2.f32 %v1763_v14 }
0x120c   :  { %v1812_v26 = vsub.f32 %v2801_v9, %v1793_v13 }
0x120e   :  { %1828 = vst [vmem:[%s2888_s8 + $0x60] sm:$0xff] %v1812_v26 }
0x1211   :  { %v2098_v48 = vpop.eup %2097 }
0x1212   :  { %v1795_v16 = vmul.f32 0.6931472, %v2098_v48  ;;  %v1765_v50 = vpop.xlane.xlu0 %1764 }
0x1213   :  { %2099 = vlog2.f32 %v1765_v50 }
0x1214   :  { %v1813_v4 = vsub.f32 %v2805_v47, %v1795_v16 }
0x1216   :  { %1829 = vst [vmem:[%s2888_s8 + $0x68] sm:$0xff] %v1813_v4 }
0x1219   :  { %v2100_v15 = vpop.eup %2099 }
0x121a   :  { %v1797_v18 = vmul.f32 0.6931472, %v2100_v15  ;;  %v1767_v40 = vpop.xlane.xlu1 %1766 }
0x121b   :  { %2101 = vlog2.f32 %v1767_v40 }
0x121c   :  { %v1814_v9 = vsub.f32 %v2809_v49, %v1797_v18 }
0x121e   :  { %1830 = vst [vmem:[%s2888_s8 + $0x70] sm:$0xff] %v1814_v9 }
0x1221   :  { %v2102_v41 = vpop.eup %2101 }
0x1222   :  { %v1799_v57 = vmul.f32 0.6931472, %v2102_v41 }
0x1224   :  { %v1815_v53 = vsub.f32 %v2813_v17, %v1799_v57 }
0x1226   :  { %1831 = vst [vmem:[%s2888_s8 + $0x78] sm:$0xff] %v1815_v53 }

</bundles_post_ra>
